<compile_context>
chip_gen: v7x
topology: tpu7x:2x2x1
jax: 0.10.0
libtpu: 0.0.40
codegen_flags: <defaults>
</compile_context>

<pallas_src>
import math

import jax
import jax.numpy as jnp
from jax.experimental import pallas as pl
from jax.experimental.pallas import tpu as pltpu

KSIZE = 7
PAD = 3  # padding = 3 for kernel_size = 7


def _spatial_attention_kernel(x_ref, a_ref, o_ref):
    # x_ref: VMEM (Bt, C, HW)         -- batch-row tile, lane-dense
    # a_ref: VMEM (2*HW, HW_pad) f32  -- fused conv operator for [sum; max]
    #                                    (1/C of the mean folded into rows [0, HW))
    # o_ref: VMEM (Bt, 1, HW_pad)     -- sigmoid(conv(...)) per batch row
    x = x_ref[...]                                        # input dtype
    s = jnp.sum(x, axis=1, dtype=jnp.float32)             # (Bt, HW), f32 accum
    mx = jnp.max(x, axis=1).astype(jnp.float32)           # (Bt, HW)
    cat = jnp.concatenate([s, mx], axis=-1)               # (Bt, 2*HW)

    # 7x7 zero-padded conv (2-in / 1-out) as ONE MXU matmul against the fused
    # dense operator. Default precision: single-pass bf16 on the MXU.
    y = jnp.dot(cat, a_ref[...], preferred_element_type=jnp.float32)

    o_ref[...] = jax.nn.sigmoid(y)[:, None, :].astype(o_ref.dtype)


def _conv_operator(conv_weight, H, W, C, HW_pad):
    """Fused dense operator A of shape (2*H*W, HW_pad): out_flat = [sum;max] @ A.

    A[c*H*W + h_in*W + w_in, h_out*W + w_out] =
        weight[0, c, h_in - h_out + PAD, w_in - w_out + PAD]
    when the offsets fall inside the 7x7 window, else 0 — exactly PyTorch's
    zero-padded cross-correlation. The avg channel's 1/C is folded into rows
    [0, H*W); columns [H*W, HW_pad) are zero padding so the kernel's output
    store stays lane-dense.
    """
    wk = conv_weight.reshape(2, KSIZE, KSIZE).astype(jnp.float32)
    wk = wk * jnp.array([1.0 / C, 1.0], jnp.float32)[:, None, None]
    h = jnp.arange(H)
    w = jnp.arange(W)
    dh = h[:, None] - h[None, :] + PAD                    # (H_in, H_out)
    dw = w[:, None] - w[None, :] + PAD                    # (W_in, W_out)
    vh = (dh >= 0) & (dh < KSIZE)
    vw = (dw >= 0) & (dw < KSIZE)
    dh = jnp.clip(dh, 0, KSIZE - 1)
    dw = jnp.clip(dw, 0, KSIZE - 1)
    # a[c, h_in, w_in, h_out, w_out]
    a = wk[:, dh[:, None, :, None], dw[None, :, None, :]]
    mask = (vh[:, None, :, None] & vw[None, :, None, :]).astype(jnp.float32)
    a = (a * mask[None]).reshape(2 * H * W, H * W)
    if HW_pad > H * W:
        a = jnp.pad(a, ((0, 0), (0, HW_pad - H * W)))
    return a


def _round_up(n, m):
    return ((n + m - 1) // m) * m


def spatial_attention(x, conv_weight, *, batch_tile=256,
                      vmem_budget_bytes=24 * 1024 * 1024):
    """x: (B, C, H, W); conv_weight: (1, 2, 7, 7). Returns (B, 1, H, W)."""
    B, C, H, W = x.shape
    HW = H * W
    HW_pad = _round_up(HW, 128)                    # lane-dense output columns
    a = _conv_operator(conv_weight, H, W, C, HW_pad)   # (2*HW, HW_pad) f32
    x2 = x.reshape(B, C, HW)                       # free, lane-dense layout

    itemsize = jnp.dtype(x.dtype).itemsize

    def tile_vmem_bytes(bt):
        x_tile = 2 * bt * C * HW * itemsize        # double-buffered input
        op = int(a.size) * 4                       # single-buffered operator
        out_tile = 2 * bt * HW_pad * itemsize      # double-buffered output
        scratch = bt * (4 * HW + 2 * HW_pad) * 4   # f32 temporaries headroom
        return x_tile + op + out_tile + scratch

    # Feed the MXU a fat M dimension, but keep >= 2 grid steps whenever B >= 2
    # (so v7x can shard the "parallel" batch axis across both TensorCores) and
    # keep the tile within the VMEM budget.
    Bt = min(batch_tile, B)
    if B >= 2:
        Bt = min(Bt, pl.cdiv(B, 2))
    if Bt >= 8:
        Bt = _round_up(Bt, 8)
    while Bt > 1 and tile_vmem_bytes(Bt) > vmem_budget_bytes:
        Bt = max(1, Bt // 2)
    vmem_limit = int(min(max(2 * tile_vmem_bytes(Bt) + (2 << 20), 16 << 20),
                         48 << 20))

    def call(operator_spec):
        return pl.pallas_call(
            _spatial_attention_kernel,
            out_shape=jax.ShapeDtypeStruct((B, 1, HW_pad), x.dtype),
            grid=(pl.cdiv(B, Bt),),
            in_specs=[
                pl.BlockSpec((Bt, C, HW), lambda b: (b, 0, 0)),   # x tile
                operator_spec,                                    # conv operator
            ],
            out_specs=pl.BlockSpec((Bt, 1, HW_pad), lambda b: (b, 0, 0)),
            compiler_params=pltpu.CompilerParams(
                dimension_semantics=("parallel",),  # disjoint outputs per step
                vmem_limit_bytes=vmem_limit,
            ),
        )(x2, a)

    try:
        # Invariant operator (constant index_map, never re-fetched): a single
        # pipeline buffer halves its VMEM footprint.
        out = call(pl.BlockSpec((2 * HW, HW_pad), lambda b: (0, 0),
                                pipeline_mode=pl.Buffered(1)))
    except Exception:
        # Compatibility fallback if single-buffering is rejected by this
        # jax/Mosaic build; correctness is identical, only VMEM use differs.
        out = call(pl.BlockSpec((2 * HW, HW_pad), lambda b: (0, 0)))

    return out[:, :, :HW].reshape(B, 1, H, W)


def _reference(x, conv_weight):
    """Pure-JAX reference mirroring the PyTorch forward (f32 precision)."""
    avg = jnp.mean(x, axis=1, keepdims=True)
    mx = jnp.max(x, axis=1, keepdims=True)
    cat = jnp.concatenate([avg, mx], axis=1)       # (B, 2, H, W)
    y = jax.lax.conv_general_dilated(
        cat, conv_weight,
        window_strides=(1, 1),
        padding=((PAD, PAD), (PAD, PAD)),
        dimension_numbers=("NCHW", "OIHW", "NCHW"),
        precision=jax.lax.Precision.HIGHEST,
    )
    return jax.nn.sigmoid(y)


if __name__ == "__main__":
    key = jax.random.PRNGKey(0)
    kx, kw = jax.random.split(key)

    B, C, H, W = 2, 4, 16, 16
    x = jax.random.normal(kx, (B, C, H, W), dtype=jnp.float32)

    # Deterministic Kaiming-uniform-style init for conv1 weight (1, 2, 7, 7).
    fan_in = 2 * KSIZE * KSIZE
    bound = 1.0 / math.sqrt(fan_in)
    conv_w = jax.random.uniform(
        kw, (1, 2, KSIZE, KSIZE), minval=-bound, maxval=bound, dtype=jnp.float32
    )

    out = spatial_attention(x, conv_w)
    out = jax.block_until_ready(out)

    ref = _reference(x, conv_w)
    assert out.shape == (B, 1, H, W)
    # Kernel matmul runs at default (single-pass bf16) MXU precision; the
    # reference conv is full f32, hence the relaxed tolerance.
    assert jnp.allclose(out, ref, rtol=2e-2, atol=2e-2), "mismatch vs reference"

    print("KERNEL_OK")
</pallas_src>

<mosaic_0001>
module attributes {stable_mosaic.version = 11 : i64} {
  func.func @_spatial_attention_kernel(%arg0: i32, %arg1: memref<1x4x256xf32, #tpu.memory_space<vmem>>, %arg2: memref<512x256xf32, #tpu.memory_space<vmem>>, %arg3: memref<1x1x256xf32, #tpu.memory_space<vmem>>) attributes {dimension_semantics = [#tpu.dimension_semantics<parallel>], iteration_bounds = array<i64: 2>, scalar_prefetch = 0 : i64, scratch_operands = 0 : i64, tpu.core_type = #tpu.core_type<tc>, window_params = [{transform_indices = @transform_0, window_bounds = array<i64: 1, 4, 256>}, {pipeline_mode = #tpu.pipeline_mode<synchronous>, transform_indices = @transform_1, window_bounds = array<i64: 512, 256>}, {transform_indices = @transform_2, window_bounds = array<i64: 1, 1, 256>}]} {
    %c0 = arith.constant 0 : index
    %c0_0 = arith.constant 0 : index
    %c0_1 = arith.constant 0 : index
    %0 = vector.load %arg1[%c0, %c0_0, %c0_1] : memref<1x4x256xf32, #tpu.memory_space<vmem>>, vector<1x4x256xf32>
    %cst = arith.constant dense<0.000000e+00> : vector<1x256xf32>
    %1 = vector.multi_reduction <add>, %0, %cst [1] : vector<1x4x256xf32> to vector<1x256xf32>
    %cst_2 = arith.constant dense<0xFF800000> : vector<1x256xf32>
    %2 = vector.multi_reduction <maximumf>, %0, %cst_2 [1] : vector<1x4x256xf32> to vector<1x256xf32>
    %3 = tpu.concatenate %1, %2 in 1 : vector<1x256xf32>, vector<1x256xf32> -> vector<1x512xf32>
    %c0_3 = arith.constant 0 : index
    %c0_4 = arith.constant 0 : index
    %4 = vector.load %arg2[%c0_3, %c0_4] : memref<512x256xf32, #tpu.memory_space<vmem>>, vector<512x256xf32>
    %cst_5 = arith.constant dense<0.000000e+00> : vector<1x256xf32>
    %5 = tpu.matmul %3, %4, %cst_5 {dimension_numbers = #tpu.dot_dimension_numbers<[1], [0], [0], [1], [0, 0, 1, 1], [], []>} : vector<1x512xf32>, vector<512x256xf32>, vector<1x256xf32> -> vector<1x256xf32>
    %6 = arith.negf %5 : vector<1x256xf32>
    %7 = math.exp %6 : vector<1x256xf32>
    %cst_6 = arith.constant 1.000000e+00 : f32
    %8 = vector.broadcast %cst_6 : f32 to vector<1x256xf32>
    %9 = arith.addf %8, %7 : vector<1x256xf32>
    %10 = arith.divf %8, %9 : vector<1x256xf32>
    %11 = vector.shape_cast %10 : vector<1x256xf32> to vector<1x1x256xf32>
    %c0_7 = arith.constant 0 : index
    %c0_8 = arith.constant 0 : index
    %c0_9 = arith.constant 0 : index
    %12 = vector.load %arg3[%c0_7, %c0_8, %c0_9] : memref<1x1x256xf32, #tpu.memory_space<vmem>>, vector<1x1x256xf32>
    tpu.vector_store %arg3[%c0_7, %c0_8, %c0_9], %11 {strides = array<i32>} : memref<1x1x256xf32, #tpu.memory_space<vmem>>, vector<1x1x256xf32>,
    return
  }
  func.func @transform_0(%arg0: i32) -> (i32, i32, i32) {
    %c0_i32 = arith.constant 0 : i32
    %c0_i32_0 = arith.constant 0 : i32
    %c0_i32_1 = arith.constant 0 : i32
    return %arg0, %c0_i32, %c0_i32_0 : i32, i32, i32
  }
  func.func @transform_1(%arg0: i32) -> (i32, i32) {
    %c0_i32 = arith.constant 0 : i32
    %c0_i32_0 = arith.constant 0 : i32
    %c0_i32_1 = arith.constant 0 : i32
    return %c0_i32, %c0_i32_0 : i32, i32
  }
  func.func @transform_2(%arg0: i32) -> (i32, i32, i32) {
    %c0_i32 = arith.constant 0 : i32
    %c0_i32_0 = arith.constant 0 : i32
    %c0_i32_1 = arith.constant 0 : i32
    return %arg0, %c0_i32, %c0_i32_0 : i32, i32, i32
  }
}

module attributes {stable_mosaic.version = 11 : i64} {
  func.func @_spatial_attention_kernel(%arg0: i32, %arg1: memref<1x4x256xf32, #tpu.memory_space<vmem>>, %arg2: memref<512x256xf32, #tpu.memory_space<vmem>>, %arg3: memref<1x1x256xf32, #tpu.memory_space<vmem>>) attributes {dimension_semantics = [#tpu.dimension_semantics<parallel>], iteration_bounds = array<i64: 2>, scalar_prefetch = 0 : i64, scratch_operands = 0 : i64, tpu.core_type = #tpu.core_type<tc>, window_params = [{transform_indices = @transform_0, window_bounds = array<i64: 1, 4, 256>}, {pipeline_mode = #tpu.pipeline_mode<synchronous>, transform_indices = @transform_1, window_bounds = array<i64: 512, 256>}, {transform_indices = @transform_2, window_bounds = array<i64: 1, 1, 256>}]} {
    %c0 = arith.constant 0 : index
    %c0_0 = arith.constant 0 : index
    %c0_1 = arith.constant 0 : index
    %0 = vector.load %arg1[%c0, %c0_0, %c0_1] : memref<1x4x256xf32, #tpu.memory_space<vmem>>, vector<1x4x256xf32>
    %cst = arith.constant dense<0.000000e+00> : vector<1x256xf32>
    %1 = vector.multi_reduction <add>, %0, %cst [1] : vector<1x4x256xf32> to vector<1x256xf32>
    %cst_2 = arith.constant dense<0xFF800000> : vector<1x256xf32>
    %2 = vector.multi_reduction <maximumf>, %0, %cst_2 [1] : vector<1x4x256xf32> to vector<1x256xf32>
    %3 = tpu.concatenate %1, %2 in 1 : vector<1x256xf32>, vector<1x256xf32> -> vector<1x512xf32>
    %c0_3 = arith.constant 0 : index
    %c0_4 = arith.constant 0 : index
    %4 = vector.load %arg2[%c0_3, %c0_4] : memref<512x256xf32, #tpu.memory_space<vmem>>, vector<512x256xf32>
    %cst_5 = arith.constant dense<0.000000e+00> : vector<1x256xf32>
    %5 = tpu.matmul %3, %4, %cst_5 {dimension_numbers = #tpu.dot_dimension_numbers<[1], [0], [0], [1], [0, 0, 1, 1], [], []>} : vector<1x512xf32>, vector<512x256xf32>, vector<1x256xf32> -> vector<1x256xf32>
    %6 = arith.negf %5 : vector<1x256xf32>
    %7 = math.exp %6 : vector<1x256xf32>
    %cst_6 = arith.constant 1.000000e+00 : f32
    %8 = vector.broadcast %cst_6 : f32 to vector<1x256xf32>
    %9 = arith.addf %8, %7 : vector<1x256xf32>
    %10 = arith.divf %8, %9 : vector<1x256xf32>
    %11 = vector.shape_cast %10 : vector<1x256xf32> to vector<1x1x256xf32>
    %c0_7 = arith.constant 0 : index
    %c0_8 = arith.constant 0 : index
    %c0_9 = arith.constant 0 : index
    %12 = vector.load %arg3[%c0_7, %c0_8, %c0_9] : memref<1x1x256xf32, #tpu.memory_space<vmem>>, vector<1x1x256xf32>
    tpu.vector_store %arg3[%c0_7, %c0_8, %c0_9], %11 {strides = array<i32>} : memref<1x1x256xf32, #tpu.memory_space<vmem>>, vector<1x1x256xf32>,
    return
  }
  func.func @transform_0(%arg0: i32) -> (i32, i32, i32) {
    %c0_i32 = arith.constant 0 : i32
    %c0_i32_0 = arith.constant 0 : i32
    %c0_i32_1 = arith.constant 0 : i32
    return %arg0, %c0_i32, %c0_i32_0 : i32, i32, i32
  }
  func.func @transform_1(%arg0: i32) -> (i32, i32) {
    %c0_i32 = arith.constant 0 : i32
    %c0_i32_0 = arith.constant 0 : i32
    %c0_i32_1 = arith.constant 0 : i32
    return %c0_i32, %c0_i32_0 : i32, i32
  }
  func.func @transform_2(%arg0: i32) -> (i32, i32, i32) {
    %c0_i32 = arith.constant 0 : i32
    %c0_i32_0 = arith.constant 0 : i32
    %c0_i32_1 = arith.constant 0 : i32
    return %arg0, %c0_i32, %c0_i32_0 : i32, i32, i32
  }
}

</mosaic_0001>

<bundles_post_ra>
// kernel: tpu_custom_call.1
= control target key start
LH: loop header
LB: loop body
LE: loop exit
PB: predicated region body
PF: predicated region fallthrough
CT: control target
= control target key end

     0   :  { %7 = vsyncpa [#allocation3], 0  ;;  %s1182_s0 = inlined_call_operand.hbm [shape: f32[2,4,256], index: 0, kind: input, shape index: {}]   ;;  %s1183_s1 = inlined_call_operand.hbm [shape: f32[512,256], index: 1, kind: input, shape index: {}]   ;;  %s1184_s2 = inlined_call_operand.hbm [shape: f32[2,1,256], index: 2, kind: output, shape index: {}]  }
   0x1   :  { %9 = vsyncpa [#allocation3 + $0x1], 0 }
   0x2   :  { %10 = vsyncpa [#allocation6], 0 }
   0x3   :  { %11 = vsyncpa [#allocation4], 0 }
   0x4   :  { %13 = vsyncpa [#allocation4 + $0x1], 0  ;;  %s978_s9 = smov 0   ;;  %s980_s10 = smov 0  }
   0x5   :  { %s982_s11 = smov 0   ;;  %s984_s12 = smov 0  }
   0x6 LB: > { %s999_s13 = sadd.s32 4294967295, %s955_s12   ;;  %s608_s14 = sadd.s32 4294967294, %s955_s12   ;;  %s955_s12 = sphi %s984_s12, %s1204_s12   ;;  %s951_s11 = sphi %s982_s11, %s1203_s11   ;;  %s947_s10 = sphi %s980_s10, %s1202_s10   ;;  %s943_s9 = sphi %s978_s9, %s1201_s9  }
   0x7   : > { %p39_p0 = scmp.ne.s32.totalorder %s947_s10, %s943_s9  ;;  %p1185_p1 = scmp.eq.s32.totalorder %s999_s13, 0 }
   0x8   : > { %p90_p3 = scmp.eq.s32.totalorder %s608_s14, 1  ;;  %p609_p5 = scmp.ge.s32.totalorder %s955_s12, 1 }
   0x9   : > { %p1008_p4 = por %p1185_p1, %p39_p0  ;;  %p97_p7 = scmp.lt.s32.totalorder %s955_s12, 3 }
   0xa   : > { %p1013_p6 = por %p90_p3, %p39_p0  ;;  %s957_s18 = smov [#allocation5]  }
   0xb   : > { %s1188_s15 = scalar_select %p1008_p4, 1, 0 }
   0xc   : > { %s1189_s16 = scalar_select %p1013_p6, 1, 0 }
   0xd   : > { %p1018_p8 = pnand %p609_p5, %p97_p7  ;;  %s109_s19 = sshll.u32 %s957_s18, 4  ;;  %s1022_s19 = int_to_ptr.vmem [resolvable:$true] %s109_s19 }
   0xe   : > { %s1034_s21 = sadd.s32 1, %s955_s12   ;;  %s26_s22 = sadd.s32 1, %s951_s11 }
   0xf   : > { %s1190_s17 = scalar_select %p1018_p8, 1, 0 }
  0x10   : > { %p766_p9 = pneg %p1018_p8  ;;  %s23_s23 = ssub.s32 %s955_s12, %s1034_s21 }
  0x11   : > { %s827_s26 = scalar_lea.hbm %s1183_s1, 16384 }
  0x12   : > { %p1029_p11 = pnand %p766_p9, %p1185_p1  ;;  %p828_p12 = scmp.ne.s32.totalorder %s1183_s1, %s827_s26 }
  0x13   : > { %p834_p5 = scmp.lt.u32.totalorder %s827_s26, %s1183_s1 }
  0x14   : > { %p829_p13 = pneg %p1029_p11 }
  0x16   : > { %p830_p0 = pnand %p829_p13, %p828_p12 }
  0x18   : > { %p831_p3 = pneg %p830_p0 }
  0x1a   : > { %p836_p7 = pnand %p834_p5, %p831_p3 }
  0x1c   : > { %839 = shalt.err (!%p836_p7)
}
  0x1d   : > { %s840_s3 = scalar_lea.vmem %s1022_s19, 16384  ;;  %p848_p2 = scmp.lt.s32.totalorder %s1022_s19, %s1022_s19 }
  0x1e   : > { %p841_p9 = scmp.ne.s32.totalorder %s1022_s19, %s840_s3  ;;  %p849_p6 = scmp.lt.s32.totalorder %s840_s3, %s840_s3 }
  0x20   : > { %p843_p10 = pnand %p841_p9, %p829_p13  ;;  %p850_p4 = por %p849_p6, %p848_p2 }
  0x22   : > { %p844_p1 = pneg %p843_p10 }
  0x24   : > { %p851_p8 = pnand %p850_p4, %p844_p1 }
  0x26   : > { %854 = shalt.err (!%p851_p8)
}
  0x27   : > { %s958_s4 = smov 256   ;;  %s959_s5 = smov 16  }
  0x28   : > { %769 = dma.hbm_to_vmem [thread:$0]  (!%p1029_p11), %s1183_s1, 16384, %s1022_s19, [#allocation6], %s958_s4, %s958_s4, %s959_s5  }
  0x29   : > { %p24_p2 = scmp.eq.s32.totalorder %s23_s23, 0  ;;  %p33_p1 = scmp.ne.s32.totalorder %s951_s11, %s947_s10 }
  0x2a   : > { %p34_p4 = scmp.eq.s32.totalorder %s955_s12, 0  ;;  %p779_p6 = scmp.lt.s32.totalorder %s955_s12, 2 }
  0x2b   : > { %s1065_s8 = scalar_select %p24_p2, %s951_s11, %s26_s22  }
  0x2c   : > { %p35_p8 = por %p34_p4, %p33_p1  ;;  %p1192_p10 = scmp.eq.s32.totalorder %s999_s13, 1 }
  0x2d   : > { %s123_s18 = sand.u32 1, %s951_s11   ;;  %s626_s24 = sshll.u32 %s955_s12, 7 }
  0x2e   : > { %p1069_p12 = por %p1192_p10, %p33_p1  ;;  %s612_s25 = sshll.u32 %s123_s18, 3 }
  0x2f   : > { %s1078_s27 = scalar_lea.hbm %s1182_s0, %s626_s24  ;;  %s127_s19 = scalar_lea.vmem [#allocation2], %s612_s25 }
  0x30   : > { %s135_s22 = sshll.u32 %s127_s19, 4  ;;  %p1080_p11 = pnand %p779_p6, %p35_p8  ;;  %s1084_s22 = int_to_ptr.vmem [resolvable:$true] %s135_s22 }
  0x31   : > { %s124_s28 = scalar_lea.sflag [#allocation3], %s123_s18  ;;  %s855_s29 = scalar_lea.hbm %s1078_s27, 128 }
  0x32   : > { %p856_p13 = scmp.ne.s32.totalorder %s1078_s27, %s855_s29  ;;  %p857_p0 = pneg %p1080_p11 }
  0x33   : > { %s860_s4 = scalar_lea.hbm %s1182_s0, 256  ;;  %p861_p7 = scmp.lt.u32.totalorder %s1078_s27, %s1182_s0 }
  0x34   : > { %p858_p3 = pnand %p857_p0, %p856_p13  ;;  %p862_p9 = scmp.lt.u32.totalorder %s860_s4, %s855_s29 }
  0x35   : > { %p864_p1 = scmp.lt.u32.totalorder %s855_s29, %s1078_s27 }
  0x36   : > { %p859_p5 = pneg %p858_p3  ;;  %p863_p2 = por %p862_p9, %p861_p7 }
  0x38   : > { %p865_p4 = por %p864_p1, %p863_p2 }
  0x3a   : > { %p866_p6 = pnand %p865_p4, %p859_p5 }
  0x3c   : > { %869 = shalt.err (!%p866_p6)
}
  0x3d   : > { %s870_s7 = scalar_lea.vmem %s1084_s22, 128  ;;  %s960_s18 = smov [#allocation2]  }
  0x3e   : > { %p871_p8 = scmp.ne.s32.totalorder %s1084_s22, %s870_s7  ;;  %s875_s24 = sshll.u32 %s960_s18, 4  ;;  %s876_s24 = int_to_ptr.vmem [resolvable:$false] %s875_s24 }
  0x3f   : > { %s877_s25 = scalar_lea.vmem %s876_s24, 256  ;;  %p878_p3 = scmp.lt.s32.totalorder %s1084_s22, %s876_s24 }
  0x40   : > { %p873_p10 = pnand %p871_p8, %p857_p0  ;;  %p879_p7 = scmp.lt.s32.totalorder %s877_s25, %s870_s7 }
  0x42   : > { %p874_p13 = pneg %p873_p10  ;;  %p880_p9 = por %p879_p7, %p878_p3 }
  0x44   : > { %p881_p2 = pnand %p880_p9, %p874_p13 }
  0x46   : > { %884 = shalt.err (!%p881_p2)
}
  0x47   : > { %773 = dma.hbm_to_vmem [thread:$0]  (!%p1080_p11), %s1078_s27, 128, %s1084_s22, %s124_s28  }
  0x48   : > { %p1195_p5 = scmp.ne.s32.totalorder %s1190_s17, 0 }
  0x49   : > { %s1114_s20 = sand.u32 (!%p1195_p5), 1, %s947_s10   ;;  %p1196_p0 = scmp.ne.s32.totalorder (!%p1195_p5), %s1188_s15, 0 }
  0x4a   : > { %144 = sbr.rel (%p1195_p5) target bundleno = 415 (0x19f), region = 28  ;;  %s616_s26 = sshll.u32 (!%p1195_p5), %s1114_s20, 3 }
  0x4b   : > { %s147_s19 = scalar_lea.sflag (!%p1195_p5), [#allocation3], %s1114_s20  ;;  %s1118_s29 = scalar_lea.vmem (!%p1195_p5), [#allocation2], %s616_s26 }
  0x51   : > { %930 = dma.done.wait (%p1196_p0), %s147_s19, 128  }
  0x52   : > { %932 = vsyncadd (%p1196_p0), %s147_s19, 4294967168  ;;  %p1197_p11 = scmp.eq.s32.totalorder %s999_s13, 0 }
  0x54   : > { %934 = dma.done.wait (%p1197_p11), [#allocation6], 16384   ;;  %p1198_p1 = pmov %p1197_p11 }
  0x55   : > { %v209_v0 = vld [vmem:[#allocation5 + $0x8] sm:$0xff]  ;;  %v211_v1 = vld [vmem:[#allocation5 + $0x18] sm:$0xff]  ;;  %v208_v5 = vld [vmem:[#allocation5] sm:$0xff]  ;;  %vm179_vm0 = vcmask 1043456   ;;  %s618_s15 = sshll.u32 %s1114_s20, 1  ;;  %s627_s17 = sshll.u32 %s999_s13, 5 }
  0x56   : > { %936 = vsyncadd (%p1198_p1), [#allocation6], 4294950912  ;;  %v273_v2 = vld [vmem:[#allocation5 + $0x208] sm:$0xff]  ;;  %v628_v3 = vpack.c.bf16 %v211_v1, %v209_v0  ;;  %v275_v4 = vld [vmem:[#allocation5 + $0x218] sm:$0xff]  ;;  %s174_s27 = scalar_lea.vmem [#allocation7], %s618_s15  ;;  %s1138_s30 = scalar_lea.hbm %s1184_s2, %s627_s17 }
  0x57   : > { %v210_v6 = vld [vmem:[#allocation5 + $0x10] sm:$0xff]  ;;  %v692_v7 = vpack.c.bf16 %v275_v4, %v273_v2  ;;  %v272_v9 = vld [vmem:[#allocation5 + $0x200] sm:$0xff]  ;;  %v213_v11 = vld [vmem:[#allocation5 + $0x28] sm:$0xff]  ;;  %s528_s22 = sshll.u32 %s174_s27, 4  ;;  %s514_s3 = scalar_lea.sflag [#allocation4], %s1114_s20  ;;  %s1140_s22 = int_to_ptr.vmem [resolvable:$true] %s528_s22 }
  0x58   : > { %v630_v8 = vpack.c.bf16 %v210_v6, %v208_v5  ;;  %v274_v10 = vld [vmem:[#allocation5 + $0x210] sm:$0xff]  ;;  %629 = vmatprep.subr.bf16.mxu1 %v628_v3  ;;  %v215_v13 = vld [vmem:[#allocation5 + $0x38] sm:$0xff]  ;;  %v277_v14 = vld [vmem:[#allocation5 + $0x228] sm:$0xff]  ;;  %s885_s4 = scalar_lea.vmem %s1140_s22, 32  ;;  %s962_s13 = smov [#allocation7]  }
  0x59   : > { %v694_v12 = vpack.c.bf16 %v274_v10, %v272_v9  ;;  %v279_v15 = vld [vmem:[#allocation5 + $0x238] sm:$0xff]  ;;  %693 = vmatprep.subr.bf16.mxu0 %v692_v7  ;;  %v632_v16 = vpack.c.bf16 %v215_v13, %v213_v11  ;;  %v212_v18 = vld [vmem:[#allocation5 + $0x20] sm:$0xff]  ;;  %v214_v19 = vld [vmem:[#allocation5 + $0x30] sm:$0xff]  ;;  %p886_p4 = scmp.ne.s32.totalorder %s1140_s22, %s885_s4  ;;  %s889_s5 = sshll.u32 %s962_s13, 4  ;;  %s890_s5 = int_to_ptr.vmem [resolvable:$false] %s889_s5 }
  0x5a   : > { %631 = vmatpush1.bf16.msra.mxu1 %v630_v8  ;;  %v696_v17 = vpack.c.bf16 %v279_v15, %v277_v14  ;;  %v276_v20 = vld [vmem:[#allocation5 + $0x220] sm:$0xff]  ;;  %v634_v21 = vpack.c.bf16 %v214_v19, %v212_v18  ;;  %v278_v22 = vld [vmem:[#allocation5 + $0x230] sm:$0xff]  ;;  %v217_v23 = vld [vmem:[#allocation5 + $0x48] sm:$0xff]  ;;  %s891_s6 = scalar_lea.vmem %s890_s5, 64  ;;  %p892_p10 = scmp.lt.s32.totalorder %s1140_s22, %s890_s5 }
  0x5b   : > { %695 = vmatpush1.bf16.msra.mxu0 %v694_v12  ;;  %v219_v24 = vld [vmem:[#allocation5 + $0x58] sm:$0xff]  ;;  %633 = vmatprep.subr.bf16.mxu1 %v632_v16  ;;  %v698_v25 = vpack.c.bf16 %v278_v22, %v276_v20  ;;  %v281_v27 = vld [vmem:[#allocation5 + $0x248] sm:$0xff]  ;;  %v216_v29 = vld [vmem:[#allocation5 + $0x40] sm:$0xff]  ;;  %p887_p6 = pnand %p886_p4, %p1069_p12  ;;  %p893_p13 = scmp.lt.s32.totalorder %s891_s6, %s885_s4 }
  0x5c   : > { %697 = vmatprep.subr.bf16.mxu0 %v696_v17  ;;  %v636_v26 = vpack.c.bf16 %v219_v24, %v217_v23  ;;  %v283_v28 = vld [vmem:[#allocation5 + $0x258] sm:$0xff]  ;;  %v218_v31 = vld [vmem:[#allocation5 + $0x50] sm:$0xff]  ;;  %v280_v32 = vld [vmem:[#allocation5 + $0x240] sm:$0xff] }
  0x5d   : > { %v700_v30 = vpack.c.bf16 %v283_v28, %v281_v27  ;;  %v282_v33 = vld [vmem:[#allocation5 + $0x250] sm:$0xff]  ;;  %v638_v34 = vpack.c.bf16 %v218_v31, %v216_v29  ;;  %v221_v35 = vld [vmem:[#allocation5 + $0x68] sm:$0xff]  ;;  %v223_v36 = vld [vmem:[#allocation5 + $0x78] sm:$0xff]  ;;  %p888_p8 = pneg %p887_p6  ;;  %p894_p3 = por %p893_p13, %p892_p10 }
  0x5e   : > { %635 = vmatpush1.bf16.msra.mxu1 %v634_v21  ;;  %v285_v37 = vld [vmem:[#allocation5 + $0x268] sm:$0xff]  ;;  %v702_v38 = vpack.c.bf16 %v282_v33, %v280_v32  ;;  %v640_v39 = vpack.c.bf16 %v223_v36, %v221_v35  ;;  %v287_v40 = vld [vmem:[#allocation5 + $0x278] sm:$0xff]  ;;  %v220_v41 = vld [vmem:[#allocation5 + $0x60] sm:$0xff] }
  0x5f   : > { %699 = vmatpush1.bf16.msra.mxu0 %v698_v25  ;;  %637 = vmatprep.subr.bf16.mxu1 %v636_v26  ;;  %v222_v42 = vld [vmem:[#allocation5 + $0x70] sm:$0xff]  ;;  %v704_v43 = vpack.c.bf16 %v287_v40, %v285_v37  ;;  %v284_v44 = vld [vmem:[#allocation5 + $0x260] sm:$0xff]  ;;  %v225_v46 = vld [vmem:[#allocation5 + $0x88] sm:$0xff]  ;;  %p895_p7 = pnand %p894_p3, %p888_p8 }
  0x60   : > { %701 = vmatprep.subr.bf16.mxu0 %v700_v30  ;;  %v286_v45 = vld [vmem:[#allocation5 + $0x270] sm:$0xff]  ;;  %v227_v47 = vld [vmem:[#allocation5 + $0x98] sm:$0xff]  ;;  %v289_v48 = vld [vmem:[#allocation5 + $0x288] sm:$0xff]  ;;  %v642_v50 = vpack.c.bf16 %v222_v42, %v220_v41 }
  0x61   : > { %v291_v49 = vld [vmem:[#allocation5 + $0x298] sm:$0xff]  ;;  %v706_v51 = vpack.c.bf16 %v286_v45, %v284_v44  ;;  %v644_v52 = vpack.c.bf16 %v227_v47, %v225_v46  ;;  %v224_v53 = vld [vmem:[#allocation5 + $0x80] sm:$0xff]  ;;  %v226_v54 = vld [vmem:[#allocation5 + $0x90] sm:$0xff] }
  0x62   : > { %639 = vmatpush1.bf16.msra.mxu1 %v638_v34  ;;  %v288_v55 = vld [vmem:[#allocation5 + $0x280] sm:$0xff]  ;;  %v708_v56 = vpack.c.bf16 %v291_v49, %v289_v48  ;;  %v290_v57 = vld [vmem:[#allocation5 + $0x290] sm:$0xff]  ;;  %v229_v58 = vld [vmem:[#allocation5 + $0xa8] sm:$0xff]  ;;  %v646_v62 = vpack.c.bf16 %v226_v54, %v224_v53 }
  0x63   : > { %703 = vmatpush1.bf16.msra.mxu0 %v702_v38  ;;  %641 = vmatprep.subr.bf16.mxu1 %v640_v39  ;;  %v231_v59 = vld [vmem:[#allocation5 + $0xb8] sm:$0xff]  ;;  %v293_v60 = vld [vmem:[#allocation5 + $0x2a8] sm:$0xff]  ;;  %v710_v63 = vpack.c.bf16 %v290_v57, %v288_v55  ;;  %v228_v1 = vld [vmem:[#allocation5 + $0xa0] sm:$0xff] }
  0x64   : > { %705 = vmatprep.subr.bf16.mxu0 %v704_v43  ;;  %v295_v61 = vld [vmem:[#allocation5 + $0x2b8] sm:$0xff]  ;;  %v648_v0 = vpack.c.bf16 %v231_v59, %v229_v58  ;;  %v230_v2 = vld [vmem:[#allocation5 + $0xb0] sm:$0xff]  ;;  %v292_v3 = vld [vmem:[#allocation5 + $0x2a0] sm:$0xff] }
  0x65   : > { %v712_v4 = vpack.c.bf16 %v295_v61, %v293_v60  ;;  %v294_v5 = vld [vmem:[#allocation5 + $0x2b0] sm:$0xff]  ;;  %v233_v6 = vld [vmem:[#allocation5 + $0xc8] sm:$0xff]  ;;  %v235_v7 = vld [vmem:[#allocation5 + $0xd8] sm:$0xff]  ;;  %v650_v10 = vpack.c.bf16 %v230_v2, %v228_v1 }
  0x66   : > { %643 = vmatpush1.bf16.msra.mxu1 %v642_v50  ;;  %v297_v8 = vld [vmem:[#allocation5 + $0x2c8] sm:$0xff]  ;;  %v299_v9 = vld [vmem:[#allocation5 + $0x2d8] sm:$0xff]  ;;  %v714_v11 = vpack.c.bf16 %v294_v5, %v292_v3  ;;  %v652_v12 = vpack.c.bf16 %v235_v7, %v233_v6  ;;  %v232_v13 = vld [vmem:[#allocation5 + $0xc0] sm:$0xff] }
  0x67   : > { %707 = vmatpush1.bf16.msra.mxu0 %v706_v51  ;;  %645 = vmatprep.subr.bf16.mxu1 %v644_v52  ;;  %v234_v14 = vld [vmem:[#allocation5 + $0xd0] sm:$0xff]  ;;  %v296_v15 = vld [vmem:[#allocation5 + $0x2c0] sm:$0xff]  ;;  %v716_v16 = vpack.c.bf16 %v299_v9, %v297_v8  ;;  %v237_v18 = vld [vmem:[#allocation5 + $0xe8] sm:$0xff] }
  0x68   : > { %709 = vmatprep.subr.bf16.mxu0 %v708_v56  ;;  %v298_v17 = vld [vmem:[#allocation5 + $0x2d0] sm:$0xff]  ;;  %v239_v19 = vld [vmem:[#allocation5 + $0xf8] sm:$0xff]  ;;  %v301_v20 = vld [vmem:[#allocation5 + $0x2e8] sm:$0xff]  ;;  %v654_v22 = vpack.c.bf16 %v234_v14, %v232_v13 }
  0x69   : > { %v303_v21 = vld [vmem:[#allocation5 + $0x2f8] sm:$0xff]  ;;  %v718_v23 = vpack.c.bf16 %v298_v17, %v296_v15  ;;  %v656_v24 = vpack.c.bf16 %v239_v19, %v237_v18  ;;  %v236_v25 = vld [vmem:[#allocation5 + $0xe0] sm:$0xff]  ;;  %v238_v26 = vld [vmem:[#allocation5 + $0xf0] sm:$0xff] }
  0x6a   : > { %647 = vmatpush1.bf16.msra.mxu1 %v646_v62  ;;  %v300_v27 = vld [vmem:[#allocation5 + $0x2e0] sm:$0xff]  ;;  %v720_v28 = vpack.c.bf16 %v303_v21, %v301_v20  ;;  %v302_v29 = vld [vmem:[#allocation5 + $0x2f0] sm:$0xff]  ;;  %v241_v30 = vld [vmem:[#allocation5 + $0x108] sm:$0xff]  ;;  %v658_v34 = vpack.c.bf16 %v238_v26, %v236_v25 }
  0x6b   : > { %711 = vmatpush1.bf16.msra.mxu0 %v710_v63  ;;  %649 = vmatprep.subr.bf16.mxu1 %v648_v0  ;;  %v243_v31 = vld [vmem:[#allocation5 + $0x118] sm:$0xff]  ;;  %v305_v32 = vld [vmem:[#allocation5 + $0x308] sm:$0xff]  ;;  %v722_v35 = vpack.c.bf16 %v302_v29, %v300_v27  ;;  %v240_v37 = vld [vmem:[#allocation5 + $0x100] sm:$0xff] }
  0x6c   : > { %713 = vmatprep.subr.bf16.mxu0 %v712_v4  ;;  %v307_v33 = vld [vmem:[#allocation5 + $0x318] sm:$0xff]  ;;  %v660_v36 = vpack.c.bf16 %v243_v31, %v241_v30  ;;  %v242_v38 = vld [vmem:[#allocation5 + $0x110] sm:$0xff]  ;;  %v304_v39 = vld [vmem:[#allocation5 + $0x300] sm:$0xff] }
  0x6d   : > { %v724_v40 = vpack.c.bf16 %v307_v33, %v305_v32  ;;  %v306_v41 = vld [vmem:[#allocation5 + $0x310] sm:$0xff]  ;;  %v245_v42 = vld [vmem:[#allocation5 + $0x128] sm:$0xff]  ;;  %v247_v43 = vld [vmem:[#allocation5 + $0x138] sm:$0xff]  ;;  %v662_v46 = vpack.c.bf16 %v242_v38, %v240_v37 }
  0x6e   : > { %651 = vmatpush1.bf16.msra.mxu1 %v650_v10  ;;  %v309_v44 = vld [vmem:[#allocation5 + $0x328] sm:$0xff]  ;;  %v311_v45 = vld [vmem:[#allocation5 + $0x338] sm:$0xff]  ;;  %v726_v47 = vpack.c.bf16 %v306_v41, %v304_v39  ;;  %v664_v48 = vpack.c.bf16 %v247_v43, %v245_v42  ;;  %v244_v49 = vld [vmem:[#allocation5 + $0x120] sm:$0xff] }
  0x6f   : > { %715 = vmatpush1.bf16.msra.mxu0 %v714_v11  ;;  %653 = vmatprep.subr.bf16.mxu1 %v652_v12  ;;  %v246_v50 = vld [vmem:[#allocation5 + $0x130] sm:$0xff]  ;;  %v308_v51 = vld [vmem:[#allocation5 + $0x320] sm:$0xff]  ;;  %v728_v52 = vpack.c.bf16 %v311_v45, %v309_v44  ;;  %v249_v54 = vld [vmem:[#allocation5 + $0x148] sm:$0xff] }
  0x70   : > { %717 = vmatprep.subr.bf16.mxu0 %v716_v16  ;;  %v310_v53 = vld [vmem:[#allocation5 + $0x330] sm:$0xff]  ;;  %v251_v55 = vld [vmem:[#allocation5 + $0x158] sm:$0xff]  ;;  %v313_v56 = vld [vmem:[#allocation5 + $0x348] sm:$0xff]  ;;  %v666_v58 = vpack.c.bf16 %v246_v50, %v244_v49 }
  0x71   : > { %v315_v57 = vld [vmem:[#allocation5 + $0x358] sm:$0xff]  ;;  %v730_v59 = vpack.c.bf16 %v310_v53, %v308_v51  ;;  %v668_v60 = vpack.c.bf16 %v251_v55, %v249_v54  ;;  %v248_v61 = vld [vmem:[#allocation5 + $0x140] sm:$0xff]  ;;  %v250_v62 = vld [vmem:[#allocation5 + $0x150] sm:$0xff] }
  0x72   : > { %655 = vmatpush1.bf16.msra.mxu1 %v654_v22  ;;  %v312_v63 = vld [vmem:[#allocation5 + $0x340] sm:$0xff]  ;;  %v732_v0 = vpack.c.bf16 %v315_v57, %v313_v56  ;;  %v314_v1 = vld [vmem:[#allocation5 + $0x350] sm:$0xff]  ;;  %v253_v2 = vld [vmem:[#allocation5 + $0x168] sm:$0xff]  ;;  %v670_v6 = vpack.c.bf16 %v250_v62, %v248_v61 }
  0x73   : > { %719 = vmatpush1.bf16.msra.mxu0 %v718_v23  ;;  %657 = vmatprep.subr.bf16.mxu1 %v656_v24  ;;  %v255_v3 = vld [vmem:[#allocation5 + $0x178] sm:$0xff]  ;;  %v317_v4 = vld [vmem:[#allocation5 + $0x368] sm:$0xff]  ;;  %v252_v7 = vld [vmem:[#allocation5 + $0x160] sm:$0xff]  ;;  %v734_v8 = vpack.c.bf16 %v314_v1, %v312_v63 }
  0x74   : > { %721 = vmatprep.subr.bf16.mxu0 %v720_v28  ;;  %v319_v5 = vld [vmem:[#allocation5 + $0x378] sm:$0xff]  ;;  %v672_v9 = vpack.c.bf16 %v255_v3, %v253_v2  ;;  %v254_v10 = vld [vmem:[#allocation5 + $0x170] sm:$0xff]  ;;  %v316_v11 = vld [vmem:[#allocation5 + $0x360] sm:$0xff] }
  0x75   : > { %v318_v12 = vld [vmem:[#allocation5 + $0x370] sm:$0xff]  ;;  %v736_v13 = vpack.c.bf16 %v319_v5, %v317_v4  ;;  %v257_v14 = vld [vmem:[#allocation5 + $0x188] sm:$0xff]  ;;  %v259_v15 = vld [vmem:[#allocation5 + $0x198] sm:$0xff]  ;;  %v674_v22 = vpack.c.bf16 %v254_v10, %v252_v7 }
  0x76   : > { %659 = vmatpush1.bf16.msra.mxu1 %v658_v34  ;;  %v175_v16 = vld [vmem:[%s1118_s29] sm:$0xff]  ;;  %v321_v17 = vld [vmem:[#allocation5 + $0x388] sm:$0xff]  ;;  %v738_v25 = vpack.c.bf16 %v318_v12, %v316_v11  ;;  %v676_v26 = vpack.c.bf16 %v259_v15, %v257_v14  ;;  %v256_v27 = vld [vmem:[#allocation5 + $0x180] sm:$0xff] }
  0x77   : > { %723 = vmatpush1.bf16.msra.mxu0 %v722_v35  ;;  %661 = vmatprep.subr.bf16.mxu1 %v660_v36  ;;  %v323_v18 = vld [vmem:[#allocation5 + $0x398] sm:$0xff]  ;;  %v177_v19 = vcombine.high %v175_v16, %v175_v16  ;;  %v180_v20 = vsel %vm179_vm0, %v175_v16, 0.0  ;;  %v194_v21 = vsel %vm179_vm0, %v175_v16, -inf  ;;  %v258_v28 = vld [vmem:[#allocation5 + $0x190] sm:$0xff]  ;;  %v320_v29 = vld [vmem:[#allocation5 + $0x380] sm:$0xff] }
  0x78   : > { %725 = vmatprep.subr.bf16.mxu0 %v724_v40  ;;  %v181_v23 = vrot.slane %v180_v20, 4  ;;  %v195_v24 = vrot.slane %v194_v21, 4  ;;  %v740_v32 = vpack.c.bf16 %v323_v18, %v321_v17  ;;  %v322_v33 = vld [vmem:[#allocation5 + $0x390] sm:$0xff]  ;;  %v261_v34 = vld [vmem:[#allocation5 + $0x1a8] sm:$0xff]  ;;  %v263_v35 = vld [vmem:[#allocation5 + $0x1b8] sm:$0xff]  ;;  %v678_v41 = vpack.c.bf16 %v258_v28, %v256_v27 }
  0x79   : > { %v187_v30 = vsel %vm179_vm0, %v177_v19, 0.0  ;;  %v201_v31 = vsel %vm179_vm0, %v177_v19, -inf  ;;  %v325_v38 = vld [vmem:[#allocation5 + $0x3a8] sm:$0xff]  ;;  %v327_v39 = vld [vmem:[#allocation5 + $0x3b8] sm:$0xff]  ;;  %v742_v45 = vpack.c.bf16 %v322_v33, %v320_v29  ;;  %v324_v49 = vld [vmem:[#allocation5 + $0x3a0] sm:$0xff] }
  0x7a   : > { %663 = vmatpush1.bf16.msra.mxu1 %v662_v46  ;;  %v188_v36 = vrot.slane %v187_v30, 4  ;;  %v202_v37 = vrot.slane %v201_v31, 4  ;;  %v182_v40 = vadd.f32 %v181_v23, %v180_v20  ;;  %v196_v44 = vmax.f32 %v194_v21, %v195_v24  ;;  %v326_v51 = vld [vmem:[#allocation5 + $0x3b0] sm:$0xff]  ;;  %v267_v53 = vld [vmem:[#allocation5 + $0x1d8] sm:$0xff]  ;;  %v329_v56 = vld [vmem:[#allocation5 + $0x3c8] sm:$0xff] }
  0x7b   : > { %727 = vmatpush1.bf16.msra.mxu0 %v726_v47  ;;  %665 = vmatprep.subr.bf16.mxu1 %v664_v48  ;;  %v680_v46 = vpack.c.bf16 %v263_v35, %v261_v34  ;;  %v260_v47 = vld [vmem:[#allocation5 + $0x1a0] sm:$0xff]  ;;  %v262_v48 = vld [vmem:[#allocation5 + $0x1b0] sm:$0xff]  ;;  %v744_v50 = vpack.c.bf16 %v327_v39, %v325_v38  ;;  %v331_v57 = vld [vmem:[#allocation5 + $0x3d8] sm:$0xff]  ;;  %v746_v63 = vpack.c.bf16 %v326_v51, %v324_v49 }
  0x7c   : > { %729 = vmatprep.subr.bf16.mxu0 %v728_v52  ;;  %v189_v42 = vadd.f32 %v188_v36, %v187_v30  ;;  %v203_v43 = vmax.f32 %v201_v31, %v202_v37  ;;  %v265_v52 = vld [vmem:[#allocation5 + $0x1c8] sm:$0xff]  ;;  %v197_v62 = vrot.slane %v196_v44, 2  ;;  %v264_v1 = vld [vmem:[#allocation5 + $0x1c0] sm:$0xff]  ;;  %v266_v2 = vld [vmem:[#allocation5 + $0x1d0] sm:$0xff]  ;;  %v748_v4 = vpack.c.bf16 %v331_v57, %v329_v56 }
  0x7d   : > { %v328_v3 = vld [vmem:[#allocation5 + $0x3c0] sm:$0xff]  ;;  %v330_v5 = vld [vmem:[#allocation5 + $0x3d0] sm:$0xff]  ;;  %v271_v7 = vld [vmem:[#allocation5 + $0x1f8] sm:$0xff] }
  0x7e   : > { %667 = vmatpush1.bf16.msra.mxu1 %v666_v58  ;;  %v190_v54 = vrot.slane %v189_v42, 2  ;;  %v204_v55 = vrot.slane %v203_v43, 2  ;;  %v183_v58 = vrot.slane %v182_v40, 2  ;;  %v333_v10 = vld [vmem:[#allocation5 + $0x3e8] sm:$0xff]  ;;  %v335_v11 = vld [vmem:[#allocation5 + $0x3f8] sm:$0xff]  ;;  %v198_v16 = vmax.f32 %v196_v44, %v197_v62  ;;  %v268_v19 = vld [vmem:[#allocation5 + $0x1e0] sm:$0xff] }
  0x7f   : > { %731 = vmatpush1.bf16.msra.mxu0 %v730_v59  ;;  %669 = vmatprep.subr.bf16.mxu1 %v668_v60  ;;  %v682_v59 = vpack.c.bf16 %v262_v48, %v260_v47  ;;  %v750_v17 = vpack.c.bf16 %v330_v5, %v328_v3  ;;  %v270_v20 = vld [vmem:[#allocation5 + $0x1f0] sm:$0xff]  ;;  %v752_v21 = vpack.c.bf16 %v335_v11, %v333_v10  ;;  %v496_v44 = vlaneseq }
  0x80   : > { %733 = vmatprep.subr.bf16.mxu0 %v732_v0  ;;  %v191_v60 = vadd.f32 %v190_v54, %v189_v42  ;;  %v205_v61 = vmax.f32 %v203_v43, %v204_v55  ;;  %v684_v0 = vpack.c.bf16 %v267_v53, %v265_v52  ;;  %v184_v12 = vadd.f32 %v183_v58, %v182_v40  ;;  %v334_v23 = vld [vmem:[#allocation5 + $0x3f0] sm:$0xff] }
  0x81   : > { %v961_v42 = vmov 1966171168   ;;  %vm510_vm1 = vcmp.lt.s32.totalorder %v496_v44, 256 }
  0x82   : > { %671 = vmatpush1.bf16.msra.mxu1 %v670_v6  ;;  %v269_v6 = vld [vmem:[#allocation5 + $0x1e8] sm:$0xff]  ;;  %v185_v24 = vrot.slane %v184_v12, 1  ;;  %v494_v43 = vunpack.c.l.s4 %v961_v42 }
  0x83   : > { %735 = vmatpush1.bf16.msra.mxu0 %v734_v8  ;;  %673 = vmatprep.subr.bf16.mxu1 %v672_v9  ;;  %v192_v8 = vrot.slane %v191_v60, 1  ;;  %v206_v9 = vrot.slane %v205_v61, 1  ;;  %v688_v18 = vpack.c.bf16 %v271_v7, %v269_v6 }
  0x84   : > { %737 = vmatprep.subr.bf16.mxu0 %v736_v13  ;;  %v686_v13 = vpack.c.bf16 %v266_v2, %v264_v1  ;;  %v186_v28 = vadd.f32 %v185_v24, %v184_v12 }
  0x85   : > { %v193_v14 = vadd.f32 %v192_v8, %v191_v60  ;;  %v207_v15 = vmax.f32 %v205_v61, %v206_v9 }
  0x86   : > { %675 = vmatpush1.bf16.msra.mxu1 %v674_v22  ;;  %v332_v22 = vld [vmem:[#allocation5 + $0x3e0] sm:$0xff] }
  0x87   : > { %739 = vmatpush1.bf16.msra.mxu0 %v738_v25  ;;  %677 = vmatprep.subr.bf16.mxu1 %v676_v26  ;;  %v690_v25 = vpack.c.bf16 %v270_v20, %v268_v19  ;;  %v199_v26 = vrot.slane %v198_v16, 1  ;;  %v754_v27 = vpack.c.bf16 %v334_v23, %v332_v22 }
  0x88   : > { %741 = vmatprep.subr.bf16.mxu0 %v740_v32  ;;  %400 = vmatprep.mubr.f32.mxu1 %v193_v14 }
  0x89   : > { %471 = vmatprep.mubr.f32.mxu0 %v207_v15  ;;  %v200_v29 = vmax.f32 %v198_v16, %v199_v26 }
  0x8a   : > { %679 = vmatpush1.bf16.msra.mxu1 %v678_v41 }
  0x8b   : > { %743 = vmatpush1.bf16.msra.mxu0 %v742_v45  ;;  %681 = vmatprep.subr.bf16.mxu1 %v680_v46  ;;  %v495_v45 = vunpack.c.0.s8 %v494_v43  ;;  %v497_v46 = vshrl.u32 %v496_v44, 7 }
  0x8c   : > { %745 = vmatprep.subr.bf16.mxu0 %v744_v50 }
  0x8d   : > { %v498_v48 = vsub.s32 %v495_v45, %v497_v46 }
  0x8e   : > { %683 = vmatpush1.bf16.msra.mxu1 %v682_v59 }
  0x8f   : > { %747 = vmatpush1.bf16.msra.mxu0 %v746_v63  ;;  %685 = vmatprep.subr.bf16.mxu1 %v684_v0 }
  0x90   : > { %749 = vmatprep.subr.bf16.mxu0 %v748_v4 }
  0x92   : > { %687 = vmatpush1.bf16.msra.mxu1 %v686_v13 }
  0x93   : > { %751 = vmatpush1.bf16.msra.mxu0 %v750_v17  ;;  %689 = vmatprep.subr.bf16.mxu1 %v688_v18 }
  0x94   : > { %753 = vmatprep.subr.bf16.mxu0 %v752_v21 }
  0x96   : > { %691 = vmatpush1.bf16.msra.mxu1 %v690_v25 }
  0x97   : > { %755 = vmatpush1.bf16.msra.mxu0 %v754_v27 }
  0x99   : > { %401 = vmatmul.mubr.f32.vlgmr.msra.gmra.mrb[0].mxu1 %v186_v28 }
  0x9a   : > { %472 = vmatmul.mubr.f32.vlgmr.msra.gmra.mrb[0].mxu0 %v200_v29 }
 0x16c   : > { %v402_v30 = vpop.f32.mrb[0].mxu1 }
 0x16d   : > { %v473_v31 = vpop.f32.mrb[0].mxu0  ;;  %v404_v32 = vpop.f32.mrb[1].mxu1 }
 0x16e   : > { %v474_v33 = vadd.f32 %v473_v31, %v402_v30  ;;  %v475_v34 = vpop.f32.mrb[1].mxu0 }
 0x16f   : > { %v476_v35 = vadd.f32 %v475_v34, %v404_v32 }
 0x170   : > { %v619_v36 = vmul.f32 -1.442695, %v474_v33 }
 0x171   : > { %v620_v37 = vmul.f32 -1.442695, %v476_v35 }
 0x172   : > { %819 = vpow2.f32 %v619_v36 }
 0x173   : > { %821 = vpow2.f32 %v620_v37 }
 0x17c   : > { %v820_v38 = vpop.eup %819 }
 0x17d   : > { %v822_v39 = vpop.eup %821  ;;  %v484_v40 = vadd.f32 1.0, %v820_v38 }
 0x17e   : > { %v485_v41 = vadd.f32 1.0, %v822_v39 }
 0x17f   : > { %823 = vrcp.f32 %v484_v40 }
 0x180   : > { %825 = vrcp.f32 %v485_v41 }
 0x189   : > { %v824_v47 = vpop.eup %823 }
 0x18a   : > { %v826_v49 = vpop.eup %825 }
 0x18b   : > { %v492_v50 = vcombine.low %v824_v47, %v826_v49 }
 0x18d   : > { %v499_v51 = vrot.slane %v492_v50, %v498_v48 }
 0x18f   : > { %v506_v52 = vrot.slane %v499_v51, %v498_v48 }
 0x191   : > { %512 = vst.msk [vmem:[%s174_s27] sm:$0x3] %vm510_vm1, %v506_v52 }
 0x192   : > { %898 = shalt.err (!%p895_p7)
}
 0x193   : > { %s899_s7 = scalar_lea.hbm %s1138_s30, 32  ;;  %s903_s25 = scalar_lea.hbm %s1184_s2, 64 }
 0x194   : > { %p900_p9 = scmp.ne.s32.totalorder %s1138_s30, %s899_s7  ;;  %p904_p0 = scmp.lt.u32.totalorder %s1138_s30, %s1184_s2 }
 0x195   : > { %p905_p11 = scmp.lt.u32.totalorder %s903_s25, %s899_s7  ;;  %p907_p4 = scmp.lt.u32.totalorder %s899_s7, %s1138_s30 }
 0x196   : > { %p901_p2 = pnand %p900_p9, %p1069_p12 }
 0x197   : > { %p906_p1 = por %p905_p11, %p904_p0 }
 0x198   : > { %p902_p5 = pneg %p901_p2 }
 0x199   : > { %p908_p6 = por %p907_p4, %p906_p1 }
 0x19b   : > { %p909_p8 = pnand %p908_p6, %p902_p5 }
 0x19d   : > { %912 = shalt.err (!%p909_p8)
}
 0x19e   : > { %764 = dma.vmem_to_hbm [thread:$0]  (%p1069_p12), %s1140_s22, 32, %s1138_s30, %s514_s3  }
 0x19f PF: > { %s540_s19 = sand.u32 1, %s943_s9   ;;  %p1199_p10 = scmp.ne.s32.totalorder %s1189_s16, 0 }
 0x1a0   : > { %p1200_p13 = scmp.ge.s32.totalorder %s955_s12, 2  ;;  %s541_s29 = scalar_lea.sflag [#allocation4], %s540_s19 }
 0x1a2   : > { %p775_p3 = pnand %p1200_p13, %p1199_p10 }
 0x1a4   : > { %938 = dma.done.wait (!%p775_p3), %s541_s29, 32  }
 0x1a5   : > { %940 = vsyncadd (!%p775_p3), %s541_s29, 4294967264  ;;  %p16_p7 = scmp.ge.s32.totalorder %s1034_s21, 4   ;;  %s1201_s9 = smov %s947_s10 }
 0x1a6   : > { %s1202_s10 = smov %s951_s11  ;;  %s1203_s11 = smov %s1065_s8 }
 0x1a7   : > { %s1204_s12 = smov %s1034_s21  ;;  %18 = sbr.rel (!%p16_p7) target bundleno = 6 (0x6), region = 77 }
 0x1ae   :  { %546 = vsyncpa [#allocation3], 1 }
 0x1af   :  { %548 = vsyncpa [#allocation3 + $0x1], 1 }
 0x1b0   :  { %549 = vsyncpa [#allocation6], 1 }
 0x1b1   :  { %550 = vsyncpa [#allocation4], 1 }
 0x1b2   :  { %552 = vsyncpa [#allocation4 + $0x1], 1 }

// kernel: tpu_custom_call.1
= control target key start
LH: loop header
LB: loop body
LE: loop exit
PB: predicated region body
PF: predicated region fallthrough
CT: control target
= control target key end

     0   :  { %7 = vsyncpa [#allocation3], 0  ;;  %s1182_s0 = inlined_call_operand.hbm [shape: f32[2,4,256], index: 0, kind: input, shape index: {}]   ;;  %s1183_s1 = inlined_call_operand.hbm [shape: f32[512,256], index: 1, kind: input, shape index: {}]   ;;  %s1184_s2 = inlined_call_operand.hbm [shape: f32[2,1,256], index: 2, kind: output, shape index: {}]  }
   0x1   :  { %9 = vsyncpa [#allocation3 + $0x1], 0 }
   0x2   :  { %10 = vsyncpa [#allocation6], 0 }
   0x3   :  { %11 = vsyncpa [#allocation4], 0 }
   0x4   :  { %13 = vsyncpa [#allocation4 + $0x1], 0  ;;  %s978_s9 = smov 0   ;;  %s980_s10 = smov 0  }
   0x5   :  { %s982_s11 = smov 0   ;;  %s984_s12 = smov 0  }
   0x6 LB: > { %s999_s13 = sadd.s32 4294967295, %s955_s12   ;;  %s608_s14 = sadd.s32 4294967294, %s955_s12   ;;  %s955_s12 = sphi %s984_s12, %s1204_s12   ;;  %s951_s11 = sphi %s982_s11, %s1203_s11   ;;  %s947_s10 = sphi %s980_s10, %s1202_s10   ;;  %s943_s9 = sphi %s978_s9, %s1201_s9  }
   0x7   : > { %p39_p0 = scmp.ne.s32.totalorder %s947_s10, %s943_s9  ;;  %p1185_p1 = scmp.eq.s32.totalorder %s999_s13, 0 }
   0x8   : > { %p90_p3 = scmp.eq.s32.totalorder %s608_s14, 1  ;;  %p609_p5 = scmp.ge.s32.totalorder %s955_s12, 1 }
   0x9   : > { %p1008_p4 = por %p1185_p1, %p39_p0  ;;  %p97_p7 = scmp.lt.s32.totalorder %s955_s12, 3 }
   0xa   : > { %p1013_p6 = por %p90_p3, %p39_p0  ;;  %s957_s18 = smov [#allocation5]  }
   0xb   : > { %s1188_s15 = scalar_select %p1008_p4, 1, 0 }
   0xc   : > { %s1189_s16 = scalar_select %p1013_p6, 1, 0 }
   0xd   : > { %p1018_p8 = pnand %p609_p5, %p97_p7  ;;  %s109_s19 = sshll.u32 %s957_s18, 4  ;;  %s1022_s19 = int_to_ptr.vmem [resolvable:$true] %s109_s19 }
   0xe   : > { %s1034_s21 = sadd.s32 1, %s955_s12   ;;  %s26_s22 = sadd.s32 1, %s951_s11 }
   0xf   : > { %s1190_s17 = scalar_select %p1018_p8, 1, 0 }
  0x10   : > { %p766_p9 = pneg %p1018_p8  ;;  %s23_s23 = ssub.s32 %s955_s12, %s1034_s21 }
  0x11   : > { %s827_s26 = scalar_lea.hbm %s1183_s1, 16384 }
  0x12   : > { %p1029_p11 = pnand %p766_p9, %p1185_p1  ;;  %p828_p12 = scmp.ne.s32.totalorder %s1183_s1, %s827_s26 }
  0x13   : > { %p834_p5 = scmp.lt.u32.totalorder %s827_s26, %s1183_s1 }
  0x14   : > { %p829_p13 = pneg %p1029_p11 }
  0x16   : > { %p830_p0 = pnand %p829_p13, %p828_p12 }
  0x18   : > { %p831_p3 = pneg %p830_p0 }
  0x1a   : > { %p836_p7 = pnand %p834_p5, %p831_p3 }
  0x1c   : > { %839 = shalt.err (!%p836_p7)
}
  0x1d   : > { %s840_s3 = scalar_lea.vmem %s1022_s19, 16384  ;;  %p848_p2 = scmp.lt.s32.totalorder %s1022_s19, %s1022_s19 }
  0x1e   : > { %p841_p9 = scmp.ne.s32.totalorder %s1022_s19, %s840_s3  ;;  %p849_p6 = scmp.lt.s32.totalorder %s840_s3, %s840_s3 }
  0x20   : > { %p843_p10 = pnand %p841_p9, %p829_p13  ;;  %p850_p4 = por %p849_p6, %p848_p2 }
  0x22   : > { %p844_p1 = pneg %p843_p10 }
  0x24   : > { %p851_p8 = pnand %p850_p4, %p844_p1 }
  0x26   : > { %854 = shalt.err (!%p851_p8)
}
  0x27   : > { %s958_s4 = smov 256   ;;  %s959_s5 = smov 16  }
  0x28   : > { %769 = dma.hbm_to_vmem [thread:$0]  (!%p1029_p11), %s1183_s1, 16384, %s1022_s19, [#allocation6], %s958_s4, %s958_s4, %s959_s5  }
  0x29   : > { %p24_p2 = scmp.eq.s32.totalorder %s23_s23, 0  ;;  %p33_p1 = scmp.ne.s32.totalorder %s951_s11, %s947_s10 }
  0x2a   : > { %p34_p4 = scmp.eq.s32.totalorder %s955_s12, 0  ;;  %p779_p6 = scmp.lt.s32.totalorder %s955_s12, 2 }
  0x2b   : > { %s1065_s8 = scalar_select %p24_p2, %s951_s11, %s26_s22  }
  0x2c   : > { %p35_p8 = por %p34_p4, %p33_p1  ;;  %p1192_p10 = scmp.eq.s32.totalorder %s999_s13, 1 }
  0x2d   : > { %s123_s18 = sand.u32 1, %s951_s11   ;;  %s626_s24 = sshll.u32 %s955_s12, 7 }
  0x2e   : > { %p1069_p12 = por %p1192_p10, %p33_p1  ;;  %s612_s25 = sshll.u32 %s123_s18, 3 }
  0x2f   : > { %s1078_s27 = scalar_lea.hbm %s1182_s0, %s626_s24  ;;  %s127_s19 = scalar_lea.vmem [#allocation2], %s612_s25 }
  0x30   : > { %s135_s22 = sshll.u32 %s127_s19, 4  ;;  %p1080_p11 = pnand %p779_p6, %p35_p8  ;;  %s1084_s22 = int_to_ptr.vmem [resolvable:$true] %s135_s22 }
  0x31   : > { %s124_s28 = scalar_lea.sflag [#allocation3], %s123_s18  ;;  %s855_s29 = scalar_lea.hbm %s1078_s27, 128 }
  0x32   : > { %p856_p13 = scmp.ne.s32.totalorder %s1078_s27, %s855_s29  ;;  %p857_p0 = pneg %p1080_p11 }
  0x33   : > { %s860_s4 = scalar_lea.hbm %s1182_s0, 256  ;;  %p861_p7 = scmp.lt.u32.totalorder %s1078_s27, %s1182_s0 }
  0x34   : > { %p858_p3 = pnand %p857_p0, %p856_p13  ;;  %p862_p9 = scmp.lt.u32.totalorder %s860_s4, %s855_s29 }
  0x35   : > { %p864_p1 = scmp.lt.u32.totalorder %s855_s29, %s1078_s27 }
  0x36   : > { %p859_p5 = pneg %p858_p3  ;;  %p863_p2 = por %p862_p9, %p861_p7 }
  0x38   : > { %p865_p4 = por %p864_p1, %p863_p2 }
  0x3a   : > { %p866_p6 = pnand %p865_p4, %p859_p5 }
  0x3c   : > { %869 = shalt.err (!%p866_p6)
}
  0x3d   : > { %s870_s7 = scalar_lea.vmem %s1084_s22, 128  ;;  %s960_s18 = smov [#allocation2]  }
  0x3e   : > { %p871_p8 = scmp.ne.s32.totalorder %s1084_s22, %s870_s7  ;;  %s875_s24 = sshll.u32 %s960_s18, 4  ;;  %s876_s24 = int_to_ptr.vmem [resolvable:$false] %s875_s24 }
  0x3f   : > { %s877_s25 = scalar_lea.vmem %s876_s24, 256  ;;  %p878_p3 = scmp.lt.s32.totalorder %s1084_s22, %s876_s24 }
  0x40   : > { %p873_p10 = pnand %p871_p8, %p857_p0  ;;  %p879_p7 = scmp.lt.s32.totalorder %s877_s25, %s870_s7 }
  0x42   : > { %p874_p13 = pneg %p873_p10  ;;  %p880_p9 = por %p879_p7, %p878_p3 }
  0x44   : > { %p881_p2 = pnand %p880_p9, %p874_p13 }
  0x46   : > { %884 = shalt.err (!%p881_p2)
}
  0x47   : > { %773 = dma.hbm_to_vmem [thread:$0]  (!%p1080_p11), %s1078_s27, 128, %s1084_s22, %s124_s28  }
  0x48   : > { %p1195_p5 = scmp.ne.s32.totalorder %s1190_s17, 0 }
  0x49   : > { %s1114_s20 = sand.u32 (!%p1195_p5), 1, %s947_s10   ;;  %p1196_p0 = scmp.ne.s32.totalorder (!%p1195_p5), %s1188_s15, 0 }
  0x4a   : > { %144 = sbr.rel (%p1195_p5) target bundleno = 415 (0x19f), region = 28  ;;  %s616_s26 = sshll.u32 (!%p1195_p5), %s1114_s20, 3 }
  0x4b   : > { %s147_s19 = scalar_lea.sflag (!%p1195_p5), [#allocation3], %s1114_s20  ;;  %s1118_s29 = scalar_lea.vmem (!%p1195_p5), [#allocation2], %s616_s26 }
  0x51   : > { %930 = dma.done.wait (%p1196_p0), %s147_s19, 128  }
  0x52   : > { %932 = vsyncadd (%p1196_p0), %s147_s19, 4294967168  ;;  %p1197_p11 = scmp.eq.s32.totalorder %s999_s13, 0 }
  0x54   : > { %934 = dma.done.wait (%p1197_p11), [#allocation6], 16384   ;;  %p1198_p1 = pmov %p1197_p11 }
  0x55   : > { %v209_v0 = vld [vmem:[#allocation5 + $0x8] sm:$0xff]  ;;  %v211_v1 = vld [vmem:[#allocation5 + $0x18] sm:$0xff]  ;;  %v208_v5 = vld [vmem:[#allocation5] sm:$0xff]  ;;  %vm179_vm0 = vcmask 1043456   ;;  %s618_s15 = sshll.u32 %s1114_s20, 1  ;;  %s627_s17 = sshll.u32 %s999_s13, 5 }
  0x56   : > { %936 = vsyncadd (%p1198_p1), [#allocation6], 4294950912  ;;  %v273_v2 = vld [vmem:[#allocation5 + $0x208] sm:$0xff]  ;;  %v628_v3 = vpack.c.bf16 %v211_v1, %v209_v0  ;;  %v275_v4 = vld [vmem:[#allocation5 + $0x218] sm:$0xff]  ;;  %s174_s27 = scalar_lea.vmem [#allocation7], %s618_s15  ;;  %s1138_s30 = scalar_lea.hbm %s1184_s2, %s627_s17 }
  0x57   : > { %v210_v6 = vld [vmem:[#allocation5 + $0x10] sm:$0xff]  ;;  %v692_v7 = vpack.c.bf16 %v275_v4, %v273_v2  ;;  %v272_v9 = vld [vmem:[#allocation5 + $0x200] sm:$0xff]  ;;  %v213_v11 = vld [vmem:[#allocation5 + $0x28] sm:$0xff]  ;;  %s528_s22 = sshll.u32 %s174_s27, 4  ;;  %s514_s3 = scalar_lea.sflag [#allocation4], %s1114_s20  ;;  %s1140_s22 = int_to_ptr.vmem [resolvable:$true] %s528_s22 }
  0x58   : > { %v630_v8 = vpack.c.bf16 %v210_v6, %v208_v5  ;;  %v274_v10 = vld [vmem:[#allocation5 + $0x210] sm:$0xff]  ;;  %629 = vmatprep.subr.bf16.mxu1 %v628_v3  ;;  %v215_v13 = vld [vmem:[#allocation5 + $0x38] sm:$0xff]  ;;  %v277_v14 = vld [vmem:[#allocation5 + $0x228] sm:$0xff]  ;;  %s885_s4 = scalar_lea.vmem %s1140_s22, 32  ;;  %s962_s13 = smov [#allocation7]  }
  0x59   : > { %v694_v12 = vpack.c.bf16 %v274_v10, %v272_v9  ;;  %v279_v15 = vld [vmem:[#allocation5 + $0x238] sm:$0xff]  ;;  %693 = vmatprep.subr.bf16.mxu0 %v692_v7  ;;  %v632_v16 = vpack.c.bf16 %v215_v13, %v213_v11  ;;  %v212_v18 = vld [vmem:[#allocation5 + $0x20] sm:$0xff]  ;;  %v214_v19 = vld [vmem:[#allocation5 + $0x30] sm:$0xff]  ;;  %p886_p4 = scmp.ne.s32.totalorder %s1140_s22, %s885_s4  ;;  %s889_s5 = sshll.u32 %s962_s13, 4  ;;  %s890_s5 = int_to_ptr.vmem [resolvable:$false] %s889_s5 }
  0x5a   : > { %631 = vmatpush1.bf16.msra.mxu1 %v630_v8  ;;  %v696_v17 = vpack.c.bf16 %v279_v15, %v277_v14  ;;  %v276_v20 = vld [vmem:[#allocation5 + $0x220] sm:$0xff]  ;;  %v634_v21 = vpack.c.bf16 %v214_v19, %v212_v18  ;;  %v278_v22 = vld [vmem:[#allocation5 + $0x230] sm:$0xff]  ;;  %v217_v23 = vld [vmem:[#allocation5 + $0x48] sm:$0xff]  ;;  %s891_s6 = scalar_lea.vmem %s890_s5, 64  ;;  %p892_p10 = scmp.lt.s32.totalorder %s1140_s22, %s890_s5 }
  0x5b   : > { %695 = vmatpush1.bf16.msra.mxu0 %v694_v12  ;;  %v219_v24 = vld [vmem:[#allocation5 + $0x58] sm:$0xff]  ;;  %633 = vmatprep.subr.bf16.mxu1 %v632_v16  ;;  %v698_v25 = vpack.c.bf16 %v278_v22, %v276_v20  ;;  %v281_v27 = vld [vmem:[#allocation5 + $0x248] sm:$0xff]  ;;  %v216_v29 = vld [vmem:[#allocation5 + $0x40] sm:$0xff]  ;;  %p887_p6 = pnand %p886_p4, %p1069_p12  ;;  %p893_p13 = scmp.lt.s32.totalorder %s891_s6, %s885_s4 }
  0x5c   : > { %697 = vmatprep.subr.bf16.mxu0 %v696_v17  ;;  %v636_v26 = vpack.c.bf16 %v219_v24, %v217_v23  ;;  %v283_v28 = vld [vmem:[#allocation5 + $0x258] sm:$0xff]  ;;  %v218_v31 = vld [vmem:[#allocation5 + $0x50] sm:$0xff]  ;;  %v280_v32 = vld [vmem:[#allocation5 + $0x240] sm:$0xff] }
  0x5d   : > { %v700_v30 = vpack.c.bf16 %v283_v28, %v281_v27  ;;  %v282_v33 = vld [vmem:[#allocation5 + $0x250] sm:$0xff]  ;;  %v638_v34 = vpack.c.bf16 %v218_v31, %v216_v29  ;;  %v221_v35 = vld [vmem:[#allocation5 + $0x68] sm:$0xff]  ;;  %v223_v36 = vld [vmem:[#allocation5 + $0x78] sm:$0xff]  ;;  %p888_p8 = pneg %p887_p6  ;;  %p894_p3 = por %p893_p13, %p892_p10 }
  0x5e   : > { %635 = vmatpush1.bf16.msra.mxu1 %v634_v21  ;;  %v285_v37 = vld [vmem:[#allocation5 + $0x268] sm:$0xff]  ;;  %v702_v38 = vpack.c.bf16 %v282_v33, %v280_v32  ;;  %v640_v39 = vpack.c.bf16 %v223_v36, %v221_v35  ;;  %v287_v40 = vld [vmem:[#allocation5 + $0x278] sm:$0xff]  ;;  %v220_v41 = vld [vmem:[#allocation5 + $0x60] sm:$0xff] }
  0x5f   : > { %699 = vmatpush1.bf16.msra.mxu0 %v698_v25  ;;  %637 = vmatprep.subr.bf16.mxu1 %v636_v26  ;;  %v222_v42 = vld [vmem:[#allocation5 + $0x70] sm:$0xff]  ;;  %v704_v43 = vpack.c.bf16 %v287_v40, %v285_v37  ;;  %v284_v44 = vld [vmem:[#allocation5 + $0x260] sm:$0xff]  ;;  %v225_v46 = vld [vmem:[#allocation5 + $0x88] sm:$0xff]  ;;  %p895_p7 = pnand %p894_p3, %p888_p8 }
  0x60   : > { %701 = vmatprep.subr.bf16.mxu0 %v700_v30  ;;  %v286_v45 = vld [vmem:[#allocation5 + $0x270] sm:$0xff]  ;;  %v227_v47 = vld [vmem:[#allocation5 + $0x98] sm:$0xff]  ;;  %v289_v48 = vld [vmem:[#allocation5 + $0x288] sm:$0xff]  ;;  %v642_v50 = vpack.c.bf16 %v222_v42, %v220_v41 }
  0x61   : > { %v291_v49 = vld [vmem:[#allocation5 + $0x298] sm:$0xff]  ;;  %v706_v51 = vpack.c.bf16 %v286_v45, %v284_v44  ;;  %v644_v52 = vpack.c.bf16 %v227_v47, %v225_v46  ;;  %v224_v53 = vld [vmem:[#allocation5 + $0x80] sm:$0xff]  ;;  %v226_v54 = vld [vmem:[#allocation5 + $0x90] sm:$0xff] }
  0x62   : > { %639 = vmatpush1.bf16.msra.mxu1 %v638_v34  ;;  %v288_v55 = vld [vmem:[#allocation5 + $0x280] sm:$0xff]  ;;  %v708_v56 = vpack.c.bf16 %v291_v49, %v289_v48  ;;  %v290_v57 = vld [vmem:[#allocation5 + $0x290] sm:$0xff]  ;;  %v229_v58 = vld [vmem:[#allocation5 + $0xa8] sm:$0xff]  ;;  %v646_v62 = vpack.c.bf16 %v226_v54, %v224_v53 }
  0x63   : > { %703 = vmatpush1.bf16.msra.mxu0 %v702_v38  ;;  %641 = vmatprep.subr.bf16.mxu1 %v640_v39  ;;  %v231_v59 = vld [vmem:[#allocation5 + $0xb8] sm:$0xff]  ;;  %v293_v60 = vld [vmem:[#allocation5 + $0x2a8] sm:$0xff]  ;;  %v710_v63 = vpack.c.bf16 %v290_v57, %v288_v55  ;;  %v228_v1 = vld [vmem:[#allocation5 + $0xa0] sm:$0xff] }
  0x64   : > { %705 = vmatprep.subr.bf16.mxu0 %v704_v43  ;;  %v295_v61 = vld [vmem:[#allocation5 + $0x2b8] sm:$0xff]  ;;  %v648_v0 = vpack.c.bf16 %v231_v59, %v229_v58  ;;  %v230_v2 = vld [vmem:[#allocation5 + $0xb0] sm:$0xff]  ;;  %v292_v3 = vld [vmem:[#allocation5 + $0x2a0] sm:$0xff] }
  0x65   : > { %v712_v4 = vpack.c.bf16 %v295_v61, %v293_v60  ;;  %v294_v5 = vld [vmem:[#allocation5 + $0x2b0] sm:$0xff]  ;;  %v233_v6 = vld [vmem:[#allocation5 + $0xc8] sm:$0xff]  ;;  %v235_v7 = vld [vmem:[#allocation5 + $0xd8] sm:$0xff]  ;;  %v650_v10 = vpack.c.bf16 %v230_v2, %v228_v1 }
  0x66   : > { %643 = vmatpush1.bf16.msra.mxu1 %v642_v50  ;;  %v297_v8 = vld [vmem:[#allocation5 + $0x2c8] sm:$0xff]  ;;  %v299_v9 = vld [vmem:[#allocation5 + $0x2d8] sm:$0xff]  ;;  %v714_v11 = vpack.c.bf16 %v294_v5, %v292_v3  ;;  %v652_v12 = vpack.c.bf16 %v235_v7, %v233_v6  ;;  %v232_v13 = vld [vmem:[#allocation5 + $0xc0] sm:$0xff] }
  0x67   : > { %707 = vmatpush1.bf16.msra.mxu0 %v706_v51  ;;  %645 = vmatprep.subr.bf16.mxu1 %v644_v52  ;;  %v234_v14 = vld [vmem:[#allocation5 + $0xd0] sm:$0xff]  ;;  %v296_v15 = vld [vmem:[#allocation5 + $0x2c0] sm:$0xff]  ;;  %v716_v16 = vpack.c.bf16 %v299_v9, %v297_v8  ;;  %v237_v18 = vld [vmem:[#allocation5 + $0xe8] sm:$0xff] }
  0x68   : > { %709 = vmatprep.subr.bf16.mxu0 %v708_v56  ;;  %v298_v17 = vld [vmem:[#allocation5 + $0x2d0] sm:$0xff]  ;;  %v239_v19 = vld [vmem:[#allocation5 + $0xf8] sm:$0xff]  ;;  %v301_v20 = vld [vmem:[#allocation5 + $0x2e8] sm:$0xff]  ;;  %v654_v22 = vpack.c.bf16 %v234_v14, %v232_v13 }
  0x69   : > { %v303_v21 = vld [vmem:[#allocation5 + $0x2f8] sm:$0xff]  ;;  %v718_v23 = vpack.c.bf16 %v298_v17, %v296_v15  ;;  %v656_v24 = vpack.c.bf16 %v239_v19, %v237_v18  ;;  %v236_v25 = vld [vmem:[#allocation5 + $0xe0] sm:$0xff]  ;;  %v238_v26 = vld [vmem:[#allocation5 + $0xf0] sm:$0xff] }
  0x6a   : > { %647 = vmatpush1.bf16.msra.mxu1 %v646_v62  ;;  %v300_v27 = vld [vmem:[#allocation5 + $0x2e0] sm:$0xff]  ;;  %v720_v28 = vpack.c.bf16 %v303_v21, %v301_v20  ;;  %v302_v29 = vld [vmem:[#allocation5 + $0x2f0] sm:$0xff]  ;;  %v241_v30 = vld [vmem:[#allocation5 + $0x108] sm:$0xff]  ;;  %v658_v34 = vpack.c.bf16 %v238_v26, %v236_v25 }
  0x6b   : > { %711 = vmatpush1.bf16.msra.mxu0 %v710_v63  ;;  %649 = vmatprep.subr.bf16.mxu1 %v648_v0  ;;  %v243_v31 = vld [vmem:[#allocation5 + $0x118] sm:$0xff]  ;;  %v305_v32 = vld [vmem:[#allocation5 + $0x308] sm:$0xff]  ;;  %v722_v35 = vpack.c.bf16 %v302_v29, %v300_v27  ;;  %v240_v37 = vld [vmem:[#allocation5 + $0x100] sm:$0xff] }
  0x6c   : > { %713 = vmatprep.subr.bf16.mxu0 %v712_v4  ;;  %v307_v33 = vld [vmem:[#allocation5 + $0x318] sm:$0xff]  ;;  %v660_v36 = vpack.c.bf16 %v243_v31, %v241_v30  ;;  %v242_v38 = vld [vmem:[#allocation5 + $0x110] sm:$0xff]  ;;  %v304_v39 = vld [vmem:[#allocation5 + $0x300] sm:$0xff] }
  0x6d   : > { %v724_v40 = vpack.c.bf16 %v307_v33, %v305_v32  ;;  %v306_v41 = vld [vmem:[#allocation5 + $0x310] sm:$0xff]  ;;  %v245_v42 = vld [vmem:[#allocation5 + $0x128] sm:$0xff]  ;;  %v247_v43 = vld [vmem:[#allocation5 + $0x138] sm:$0xff]  ;;  %v662_v46 = vpack.c.bf16 %v242_v38, %v240_v37 }
  0x6e   : > { %651 = vmatpush1.bf16.msra.mxu1 %v650_v10  ;;  %v309_v44 = vld [vmem:[#allocation5 + $0x328] sm:$0xff]  ;;  %v311_v45 = vld [vmem:[#allocation5 + $0x338] sm:$0xff]  ;;  %v726_v47 = vpack.c.bf16 %v306_v41, %v304_v39  ;;  %v664_v48 = vpack.c.bf16 %v247_v43, %v245_v42  ;;  %v244_v49 = vld [vmem:[#allocation5 + $0x120] sm:$0xff] }
  0x6f   : > { %715 = vmatpush1.bf16.msra.mxu0 %v714_v11  ;;  %653 = vmatprep.subr.bf16.mxu1 %v652_v12  ;;  %v246_v50 = vld [vmem:[#allocation5 + $0x130] sm:$0xff]  ;;  %v308_v51 = vld [vmem:[#allocation5 + $0x320] sm:$0xff]  ;;  %v728_v52 = vpack.c.bf16 %v311_v45, %v309_v44  ;;  %v249_v54 = vld [vmem:[#allocation5 + $0x148] sm:$0xff] }
  0x70   : > { %717 = vmatprep.subr.bf16.mxu0 %v716_v16  ;;  %v310_v53 = vld [vmem:[#allocation5 + $0x330] sm:$0xff]  ;;  %v251_v55 = vld [vmem:[#allocation5 + $0x158] sm:$0xff]  ;;  %v313_v56 = vld [vmem:[#allocation5 + $0x348] sm:$0xff]  ;;  %v666_v58 = vpack.c.bf16 %v246_v50, %v244_v49 }
  0x71   : > { %v315_v57 = vld [vmem:[#allocation5 + $0x358] sm:$0xff]  ;;  %v730_v59 = vpack.c.bf16 %v310_v53, %v308_v51  ;;  %v668_v60 = vpack.c.bf16 %v251_v55, %v249_v54  ;;  %v248_v61 = vld [vmem:[#allocation5 + $0x140] sm:$0xff]  ;;  %v250_v62 = vld [vmem:[#allocation5 + $0x150] sm:$0xff] }
  0x72   : > { %655 = vmatpush1.bf16.msra.mxu1 %v654_v22  ;;  %v312_v63 = vld [vmem:[#allocation5 + $0x340] sm:$0xff]  ;;  %v732_v0 = vpack.c.bf16 %v315_v57, %v313_v56  ;;  %v314_v1 = vld [vmem:[#allocation5 + $0x350] sm:$0xff]  ;;  %v253_v2 = vld [vmem:[#allocation5 + $0x168] sm:$0xff]  ;;  %v670_v6 = vpack.c.bf16 %v250_v62, %v248_v61 }
  0x73   : > { %719 = vmatpush1.bf16.msra.mxu0 %v718_v23  ;;  %657 = vmatprep.subr.bf16.mxu1 %v656_v24  ;;  %v255_v3 = vld [vmem:[#allocation5 + $0x178] sm:$0xff]  ;;  %v317_v4 = vld [vmem:[#allocation5 + $0x368] sm:$0xff]  ;;  %v252_v7 = vld [vmem:[#allocation5 + $0x160] sm:$0xff]  ;;  %v734_v8 = vpack.c.bf16 %v314_v1, %v312_v63 }
  0x74   : > { %721 = vmatprep.subr.bf16.mxu0 %v720_v28  ;;  %v319_v5 = vld [vmem:[#allocation5 + $0x378] sm:$0xff]  ;;  %v672_v9 = vpack.c.bf16 %v255_v3, %v253_v2  ;;  %v254_v10 = vld [vmem:[#allocation5 + $0x170] sm:$0xff]  ;;  %v316_v11 = vld [vmem:[#allocation5 + $0x360] sm:$0xff] }
  0x75   : > { %v318_v12 = vld [vmem:[#allocation5 + $0x370] sm:$0xff]  ;;  %v736_v13 = vpack.c.bf16 %v319_v5, %v317_v4  ;;  %v257_v14 = vld [vmem:[#allocation5 + $0x188] sm:$0xff]  ;;  %v259_v15 = vld [vmem:[#allocation5 + $0x198] sm:$0xff]  ;;  %v674_v22 = vpack.c.bf16 %v254_v10, %v252_v7 }
  0x76   : > { %659 = vmatpush1.bf16.msra.mxu1 %v658_v34  ;;  %v175_v16 = vld [vmem:[%s1118_s29] sm:$0xff]  ;;  %v321_v17 = vld [vmem:[#allocation5 + $0x388] sm:$0xff]  ;;  %v738_v25 = vpack.c.bf16 %v318_v12, %v316_v11  ;;  %v676_v26 = vpack.c.bf16 %v259_v15, %v257_v14  ;;  %v256_v27 = vld [vmem:[#allocation5 + $0x180] sm:$0xff] }
  0x77   : > { %723 = vmatpush1.bf16.msra.mxu0 %v722_v35  ;;  %661 = vmatprep.subr.bf16.mxu1 %v660_v36  ;;  %v323_v18 = vld [vmem:[#allocation5 + $0x398] sm:$0xff]  ;;  %v177_v19 = vcombine.high %v175_v16, %v175_v16  ;;  %v180_v20 = vsel %vm179_vm0, %v175_v16, 0.0  ;;  %v194_v21 = vsel %vm179_vm0, %v175_v16, -inf  ;;  %v258_v28 = vld [vmem:[#allocation5 + $0x190] sm:$0xff]  ;;  %v320_v29 = vld [vmem:[#allocation5 + $0x380] sm:$0xff] }
  0x78   : > { %725 = vmatprep.subr.bf16.mxu0 %v724_v40  ;;  %v181_v23 = vrot.slane %v180_v20, 4  ;;  %v195_v24 = vrot.slane %v194_v21, 4  ;;  %v740_v32 = vpack.c.bf16 %v323_v18, %v321_v17  ;;  %v322_v33 = vld [vmem:[#allocation5 + $0x390] sm:$0xff]  ;;  %v261_v34 = vld [vmem:[#allocation5 + $0x1a8] sm:$0xff]  ;;  %v263_v35 = vld [vmem:[#allocation5 + $0x1b8] sm:$0xff]  ;;  %v678_v41 = vpack.c.bf16 %v258_v28, %v256_v27 }
  0x79   : > { %v187_v30 = vsel %vm179_vm0, %v177_v19, 0.0  ;;  %v201_v31 = vsel %vm179_vm0, %v177_v19, -inf  ;;  %v325_v38 = vld [vmem:[#allocation5 + $0x3a8] sm:$0xff]  ;;  %v327_v39 = vld [vmem:[#allocation5 + $0x3b8] sm:$0xff]  ;;  %v742_v45 = vpack.c.bf16 %v322_v33, %v320_v29  ;;  %v324_v49 = vld [vmem:[#allocation5 + $0x3a0] sm:$0xff] }
  0x7a   : > { %663 = vmatpush1.bf16.msra.mxu1 %v662_v46  ;;  %v188_v36 = vrot.slane %v187_v30, 4  ;;  %v202_v37 = vrot.slane %v201_v31, 4  ;;  %v182_v40 = vadd.f32 %v181_v23, %v180_v20  ;;  %v196_v44 = vmax.f32 %v194_v21, %v195_v24  ;;  %v326_v51 = vld [vmem:[#allocation5 + $0x3b0] sm:$0xff]  ;;  %v267_v53 = vld [vmem:[#allocation5 + $0x1d8] sm:$0xff]  ;;  %v329_v56 = vld [vmem:[#allocation5 + $0x3c8] sm:$0xff] }
  0x7b   : > { %727 = vmatpush1.bf16.msra.mxu0 %v726_v47  ;;  %665 = vmatprep.subr.bf16.mxu1 %v664_v48  ;;  %v680_v46 = vpack.c.bf16 %v263_v35, %v261_v34  ;;  %v260_v47 = vld [vmem:[#allocation5 + $0x1a0] sm:$0xff]  ;;  %v262_v48 = vld [vmem:[#allocation5 + $0x1b0] sm:$0xff]  ;;  %v744_v50 = vpack.c.bf16 %v327_v39, %v325_v38  ;;  %v331_v57 = vld [vmem:[#allocation5 + $0x3d8] sm:$0xff]  ;;  %v746_v63 = vpack.c.bf16 %v326_v51, %v324_v49 }
  0x7c   : > { %729 = vmatprep.subr.bf16.mxu0 %v728_v52  ;;  %v189_v42 = vadd.f32 %v188_v36, %v187_v30  ;;  %v203_v43 = vmax.f32 %v201_v31, %v202_v37  ;;  %v265_v52 = vld [vmem:[#allocation5 + $0x1c8] sm:$0xff]  ;;  %v197_v62 = vrot.slane %v196_v44, 2  ;;  %v264_v1 = vld [vmem:[#allocation5 + $0x1c0] sm:$0xff]  ;;  %v266_v2 = vld [vmem:[#allocation5 + $0x1d0] sm:$0xff]  ;;  %v748_v4 = vpack.c.bf16 %v331_v57, %v329_v56 }
  0x7d   : > { %v328_v3 = vld [vmem:[#allocation5 + $0x3c0] sm:$0xff]  ;;  %v330_v5 = vld [vmem:[#allocation5 + $0x3d0] sm:$0xff]  ;;  %v271_v7 = vld [vmem:[#allocation5 + $0x1f8] sm:$0xff] }
  0x7e   : > { %667 = vmatpush1.bf16.msra.mxu1 %v666_v58  ;;  %v190_v54 = vrot.slane %v189_v42, 2  ;;  %v204_v55 = vrot.slane %v203_v43, 2  ;;  %v183_v58 = vrot.slane %v182_v40, 2  ;;  %v333_v10 = vld [vmem:[#allocation5 + $0x3e8] sm:$0xff]  ;;  %v335_v11 = vld [vmem:[#allocation5 + $0x3f8] sm:$0xff]  ;;  %v198_v16 = vmax.f32 %v196_v44, %v197_v62  ;;  %v268_v19 = vld [vmem:[#allocation5 + $0x1e0] sm:$0xff] }
  0x7f   : > { %731 = vmatpush1.bf16.msra.mxu0 %v730_v59  ;;  %669 = vmatprep.subr.bf16.mxu1 %v668_v60  ;;  %v682_v59 = vpack.c.bf16 %v262_v48, %v260_v47  ;;  %v750_v17 = vpack.c.bf16 %v330_v5, %v328_v3  ;;  %v270_v20 = vld [vmem:[#allocation5 + $0x1f0] sm:$0xff]  ;;  %v752_v21 = vpack.c.bf16 %v335_v11, %v333_v10  ;;  %v496_v44 = vlaneseq }
  0x80   : > { %733 = vmatprep.subr.bf16.mxu0 %v732_v0  ;;  %v191_v60 = vadd.f32 %v190_v54, %v189_v42  ;;  %v205_v61 = vmax.f32 %v203_v43, %v204_v55  ;;  %v684_v0 = vpack.c.bf16 %v267_v53, %v265_v52  ;;  %v184_v12 = vadd.f32 %v183_v58, %v182_v40  ;;  %v334_v23 = vld [vmem:[#allocation5 + $0x3f0] sm:$0xff] }
  0x81   : > { %v961_v42 = vmov 1966171168   ;;  %vm510_vm1 = vcmp.lt.s32.totalorder %v496_v44, 256 }
  0x82   : > { %671 = vmatpush1.bf16.msra.mxu1 %v670_v6  ;;  %v269_v6 = vld [vmem:[#allocation5 + $0x1e8] sm:$0xff]  ;;  %v185_v24 = vrot.slane %v184_v12, 1  ;;  %v494_v43 = vunpack.c.l.s4 %v961_v42 }
  0x83   : > { %735 = vmatpush1.bf16.msra.mxu0 %v734_v8  ;;  %673 = vmatprep.subr.bf16.mxu1 %v672_v9  ;;  %v192_v8 = vrot.slane %v191_v60, 1  ;;  %v206_v9 = vrot.slane %v205_v61, 1  ;;  %v688_v18 = vpack.c.bf16 %v271_v7, %v269_v6 }
  0x84   : > { %737 = vmatprep.subr.bf16.mxu0 %v736_v13  ;;  %v686_v13 = vpack.c.bf16 %v266_v2, %v264_v1  ;;  %v186_v28 = vadd.f32 %v185_v24, %v184_v12 }
  0x85   : > { %v193_v14 = vadd.f32 %v192_v8, %v191_v60  ;;  %v207_v15 = vmax.f32 %v205_v61, %v206_v9 }
  0x86   : > { %675 = vmatpush1.bf16.msra.mxu1 %v674_v22  ;;  %v332_v22 = vld [vmem:[#allocation5 + $0x3e0] sm:$0xff] }
  0x87   : > { %739 = vmatpush1.bf16.msra.mxu0 %v738_v25  ;;  %677 = vmatprep.subr.bf16.mxu1 %v676_v26  ;;  %v690_v25 = vpack.c.bf16 %v270_v20, %v268_v19  ;;  %v199_v26 = vrot.slane %v198_v16, 1  ;;  %v754_v27 = vpack.c.bf16 %v334_v23, %v332_v22 }
  0x88   : > { %741 = vmatprep.subr.bf16.mxu0 %v740_v32  ;;  %400 = vmatprep.mubr.f32.mxu1 %v193_v14 }
  0x89   : > { %471 = vmatprep.mubr.f32.mxu0 %v207_v15  ;;  %v200_v29 = vmax.f32 %v198_v16, %v199_v26 }
  0x8a   : > { %679 = vmatpush1.bf16.msra.mxu1 %v678_v41 }
  0x8b   : > { %743 = vmatpush1.bf16.msra.mxu0 %v742_v45  ;;  %681 = vmatprep.subr.bf16.mxu1 %v680_v46  ;;  %v495_v45 = vunpack.c.0.s8 %v494_v43  ;;  %v497_v46 = vshrl.u32 %v496_v44, 7 }
  0x8c   : > { %745 = vmatprep.subr.bf16.mxu0 %v744_v50 }
  0x8d   : > { %v498_v48 = vsub.s32 %v495_v45, %v497_v46 }
  0x8e   : > { %683 = vmatpush1.bf16.msra.mxu1 %v682_v59 }
  0x8f   : > { %747 = vmatpush1.bf16.msra.mxu0 %v746_v63  ;;  %685 = vmatprep.subr.bf16.mxu1 %v684_v0 }
  0x90   : > { %749 = vmatprep.subr.bf16.mxu0 %v748_v4 }
  0x92   : > { %687 = vmatpush1.bf16.msra.mxu1 %v686_v13 }
  0x93   : > { %751 = vmatpush1.bf16.msra.mxu0 %v750_v17  ;;  %689 = vmatprep.subr.bf16.mxu1 %v688_v18 }
  0x94   : > { %753 = vmatprep.subr.bf16.mxu0 %v752_v21 }
  0x96   : > { %691 = vmatpush1.bf16.msra.mxu1 %v690_v25 }
  0x97   : > { %755 = vmatpush1.bf16.msra.mxu0 %v754_v27 }
  0x99   : > { %401 = vmatmul.mubr.f32.vlgmr.msra.gmra.mrb[0].mxu1 %v186_v28 }
  0x9a   : > { %472 = vmatmul.mubr.f32.vlgmr.msra.gmra.mrb[0].mxu0 %v200_v29 }
 0x16c   : > { %v402_v30 = vpop.f32.mrb[0].mxu1 }
 0x16d   : > { %v473_v31 = vpop.f32.mrb[0].mxu0  ;;  %v404_v32 = vpop.f32.mrb[1].mxu1 }
 0x16e   : > { %v474_v33 = vadd.f32 %v473_v31, %v402_v30  ;;  %v475_v34 = vpop.f32.mrb[1].mxu0 }
 0x16f   : > { %v476_v35 = vadd.f32 %v475_v34, %v404_v32 }
 0x170   : > { %v619_v36 = vmul.f32 -1.442695, %v474_v33 }
 0x171   : > { %v620_v37 = vmul.f32 -1.442695, %v476_v35 }
 0x172   : > { %819 = vpow2.f32 %v619_v36 }
 0x173   : > { %821 = vpow2.f32 %v620_v37 }
 0x17c   : > { %v820_v38 = vpop.eup %819 }
 0x17d   : > { %v822_v39 = vpop.eup %821  ;;  %v484_v40 = vadd.f32 1.0, %v820_v38 }
 0x17e   : > { %v485_v41 = vadd.f32 1.0, %v822_v39 }
 0x17f   : > { %823 = vrcp.f32 %v484_v40 }
 0x180   : > { %825 = vrcp.f32 %v485_v41 }
 0x189   : > { %v824_v47 = vpop.eup %823 }
 0x18a   : > { %v826_v49 = vpop.eup %825 }
 0x18b   : > { %v492_v50 = vcombine.low %v824_v47, %v826_v49 }
 0x18d   : > { %v499_v51 = vrot.slane %v492_v50, %v498_v48 }
 0x18f   : > { %v506_v52 = vrot.slane %v499_v51, %v498_v48 }
 0x191   : > { %512 = vst.msk [vmem:[%s174_s27] sm:$0x3] %vm510_vm1, %v506_v52 }
 0x192   : > { %898 = shalt.err (!%p895_p7)
}
 0x193   : > { %s899_s7 = scalar_lea.hbm %s1138_s30, 32  ;;  %s903_s25 = scalar_lea.hbm %s1184_s2, 64 }
 0x194   : > { %p900_p9 = scmp.ne.s32.totalorder %s1138_s30, %s899_s7  ;;  %p904_p0 = scmp.lt.u32.totalorder %s1138_s30, %s1184_s2 }
 0x195   : > { %p905_p11 = scmp.lt.u32.totalorder %s903_s25, %s899_s7  ;;  %p907_p4 = scmp.lt.u32.totalorder %s899_s7, %s1138_s30 }
 0x196   : > { %p901_p2 = pnand %p900_p9, %p1069_p12 }
 0x197   : > { %p906_p1 = por %p905_p11, %p904_p0 }
 0x198   : > { %p902_p5 = pneg %p901_p2 }
 0x199   : > { %p908_p6 = por %p907_p4, %p906_p1 }
 0x19b   : > { %p909_p8 = pnand %p908_p6, %p902_p5 }
 0x19d   : > { %912 = shalt.err (!%p909_p8)
}
 0x19e   : > { %764 = dma.vmem_to_hbm [thread:$0]  (%p1069_p12), %s1140_s22, 32, %s1138_s30, %s514_s3  }
 0x19f PF: > { %s540_s19 = sand.u32 1, %s943_s9   ;;  %p1199_p10 = scmp.ne.s32.totalorder %s1189_s16, 0 }
 0x1a0   : > { %p1200_p13 = scmp.ge.s32.totalorder %s955_s12, 2  ;;  %s541_s29 = scalar_lea.sflag [#allocation4], %s540_s19 }
 0x1a2   : > { %p775_p3 = pnand %p1200_p13, %p1199_p10 }
 0x1a4   : > { %938 = dma.done.wait (!%p775_p3), %s541_s29, 32  }
 0x1a5   : > { %940 = vsyncadd (!%p775_p3), %s541_s29, 4294967264  ;;  %p16_p7 = scmp.ge.s32.totalorder %s1034_s21, 4   ;;  %s1201_s9 = smov %s947_s10 }
 0x1a6   : > { %s1202_s10 = smov %s951_s11  ;;  %s1203_s11 = smov %s1065_s8 }
 0x1a7   : > { %s1204_s12 = smov %s1034_s21  ;;  %18 = sbr.rel (!%p16_p7) target bundleno = 6 (0x6), region = 77 }
 0x1ae   :  { %546 = vsyncpa [#allocation3], 1 }
 0x1af   :  { %548 = vsyncpa [#allocation3 + $0x1], 1 }
 0x1b0   :  { %549 = vsyncpa [#allocation6], 1 }
 0x1b1   :  { %550 = vsyncpa [#allocation4], 1 }
 0x1b2   :  { %552 = vsyncpa [#allocation4 + $0x1], 1 }

</bundles_post_ra>
